<compile_context>
chip_gen: v7x
topology: tpu7x:2x2x1
jax: 0.10.0
libtpu: 0.0.40
codegen_flags: <defaults>
</compile_context>

<pallas_src>
import functools

import jax
import jax.numpy as jnp
from jax import lax
from jax.experimental import pallas as pl
from jax.experimental.pallas import tpu as pltpu


# Numerics/perf trade (review): the serial RK4 chain dominates wall-clock;
# halving this roughly halves latency.  Keep 8 unless validated otherwise.
RK4_SUBSTEPS = 8


# ----------------------------------------------------------------- kernel ---

def make_fused_kernel(S, B, D, H, L, T, dts, rk4_substeps):
    """Build the fused forward kernel.  Loop bounds / dt's are baked in as
    Python constants (they come from static n, m)."""
    f32 = jnp.float32

    def kernel(x_ref, eps_ref,
               wihr_ref, wihz_ref, wihn_ref,
               br_ref, bz_ref, bin_ref, bhn_ref,
               whh_ref,
               wml_ref, bml_ref, wg_ref, bg_ref,
               w1_ref, b1_ref, w2_ref, b2_ref,
               wdb_ref, bdb_ref,
               out_ref, head_ref,
               y_sc):
        # ---- hoist every weight / bias read out of all loops --------------
        wih_r = wihr_ref[...]
        wih_z = wihz_ref[...]
        wih_n = wihn_ref[...]
        b_r = br_ref[...]          # b_ir + b_hr (folded in wrapper)
        b_z = bz_ref[...]          # b_iz + b_hz
        b_in = bin_ref[...]        # b_in only
        b_hn = bhn_ref[...]        # b_hn (must stay inside r * (...))
        whh = whh_ref[...]         # packed (H, 3H): one push per GRU step
        wml = wml_ref[...]
        bml = bml_ref[...]
        wg = wg_ref[...]
        bg = bg_ref[...]
        w1 = w1_ref[...]
        b1 = b1_ref[...]
        w2 = w2_ref[...]
        b2 = b2_ref[...]
        wd_blk = wdb_ref[...]      # block-diag kron(I_T, W_dec): (T*L, T*D)
        bd_blk = bdb_ref[...]      # tiled decoder bias: (1, T*D)

        # ---- GRU encoder (PyTorch gate order r, z, n) ----------------------
        # Batched input projection (per-gate, weights pre-split in wrapper):
        # three (S*B, D) @ (D, H) matmuls up front, biases folded in.
        x2d = x_ref[...]                                             # (S*B, D)
        gi_r = jnp.dot(x2d, wih_r, preferred_element_type=f32) + b_r
        gi_z = jnp.dot(x2d, wih_z, preferred_element_type=f32) + b_z
        gi_n = jnp.dot(x2d, wih_n, preferred_element_type=f32) + b_in

        # Recurrence: ONE (B,H)@(H,3H) MXU push per step; the per-step
        # gi_* row slices do not depend on h, so in this unrolled region the
        # scheduler can hoist them off the serial h-chain.
        h = jnp.zeros((B, H), f32)
        for t in range(S):                                           # unrolled
            i_r = gi_r[t * B:(t + 1) * B, :]
            i_z = gi_z[t * B:(t + 1) * B, :]
            i_n = gi_n[t * B:(t + 1) * B, :]
            gh = jnp.dot(h, whh, preferred_element_type=f32)         # (B, 3H)
            r = jax.nn.sigmoid(i_r + gh[:, 0:H])
            z = jax.nn.sigmoid(i_z + gh[:, H:2 * H])
            n_ = jnp.tanh(i_n + r * (gh[:, 2 * H:3 * H] + b_hn))
            h = (1.0 - z) * n_ + z * h

        # ---- VAE head: single fused mu|logvar matmul + single store --------
        head = jnp.dot(h, wml, preferred_element_type=f32) + bml     # (B, 2H)
        head_ref[...] = head                       # one 2H-lane store
        mu = head[:, 0:H]
        logvar = head[:, H:2 * H]
        std = jnp.exp(0.5 * logvar)
        z0 = mu + std * eps_ref[...]
        y0 = jnp.dot(z0, wg, preferred_element_type=f32) + bg        # (B, L)

        # ---- latent ODE: fixed-step RK4 (fori_loop over substeps) ----------
        def softplus(v):
            return jnp.maximum(v, 0.0) + jnp.log1p(jnp.exp(-jnp.abs(v)))

        def f(y):
            h1 = jnp.dot(y, w1, preferred_element_type=f32) + b1
            return jnp.dot(softplus(h1), w2, preferred_element_type=f32) + b2

        # odeint()[0] == y0
        y_sc[:, 0:L] = y0
        y = y0
        for k in range(1, T):                      # T-1 intervals (unrolled)
            dt = dts[k - 1] / float(rk4_substeps)  # python constant

            def substep(_, yc, dt=dt):
                k1 = f(yc)
                k2 = f(yc + (0.5 * dt) * k1)
                k3 = f(yc + (0.5 * dt) * k2)
                k4 = f(yc + dt * k3)
                return yc + (dt / 6.0) * (k1 + 2.0 * k2 + 2.0 * k3 + k4)

            y = lax.fori_loop(0, rk4_substeps, substep, y)
            y_sc[:, k * L:(k + 1) * L] = y         # pack lane-wise (B, T*L)

        # ---- decode ALL T states with one block-diag matmul + one store ----
        lat = y_sc[...]                                              # (B, T*L)
        out_ref[...] = (jnp.dot(lat, wd_blk, preferred_element_type=f32)
                        + bd_blk)                                    # (B, T*D)

    return kernel


# ---------------------------------------------------------------- wrapper ---

def predict_model_forward(params, x_bsd, n, m, eps_key):
    """x_bsd: (B, S, D_in) float32, batch-first (PyTorch convention).
    n, m: Python ints (static).  Returns (out (B, n+m, D_in), mu, logvar)."""
    B, S, D = x_bsd.shape
    H = params["wml_t"].shape[0]
    L = params["wg_t"].shape[1]
    T = n + m

    # t = torch.linspace(0, n+m-1, n+m) -> consecutive spacing is exactly 1.0.
    dts = tuple(1.0 for _ in range(T - 1))

    # ---- wrapper-side layout plumbing (free XLA slices on param constants) --
    wih = params["gru_wih_t"]          # (D, 3H), columns [r | z | n]
    whh = params["gru_whh_t"]          # (H, 3H), stays packed
    bih = params["gru_bih"]            # (1, 3H)
    bhh = params["gru_bhh"]            # (1, 3H)
    wih_r, wih_z, wih_n = wih[:, 0:H], wih[:, H:2 * H], wih[:, 2 * H:3 * H]
    # Fold b_hr / b_hz into the input projection (plain adds); b_hn must stay
    # separate because PyTorch applies it inside r * (W_hn h + b_hn).
    b_r = bih[:, 0:H] + bhh[:, 0:H]
    b_z = bih[:, H:2 * H] + bhh[:, H:2 * H]
    b_in = bih[:, 2 * H:3 * H]
    b_hn = bhh[:, 2 * H:3 * H]

    # Block-diagonal decoder: (B, T*L) @ (T*L, T*D) decodes every timestep in
    # ONE MXU push and directly yields the batch-major (B, T*D) output layout
    # (no post-kernel transpose; reshape below is a bitcast).
    wd_blk = jnp.kron(jnp.eye(T, dtype=jnp.float32), params["wd_t"])  # (T*L, T*D)
    bd_blk = jnp.tile(params["bd"], (1, T))                           # (1, T*D)

    # Time-major flattened rows: the GRU input projection becomes batched
    # matmuls with contiguous per-step row blocks.
    x2d = jnp.transpose(x_bsd, (1, 0, 2)).reshape(S * B, D)

    # Deterministic "randn_like" for reparameterization.
    eps = jax.random.normal(eps_key, (B, H), jnp.float32)

    kernel = make_fused_kernel(S, B, D, H, L, T, dts, RK4_SUBSTEPS)
    vmem = pl.BlockSpec(memory_space=pltpu.MemorySpace.VMEM)

    out_flat, head = pl.pallas_call(
        kernel,
        out_shape=(jax.ShapeDtypeStruct((B, T * D), jnp.float32),
                   jax.ShapeDtypeStruct((B, 2 * H), jnp.float32)),
        in_specs=[vmem] * 20,
        out_specs=(vmem, vmem),
        scratch_shapes=[pltpu.VMEM((B, T * L), jnp.float32)],
    )(x2d, eps,
      wih_r, wih_z, wih_n,
      b_r, b_z, b_in, b_hn,
      whh,
      params["wml_t"], params["bml"],
      params["wg_t"], params["bg"],
      params["ode_w1_t"], params["ode_b1"],
      params["ode_w2_t"], params["ode_b2"],
      wd_blk, bd_blk)

    out = out_flat.reshape(B, T, D)        # free bitcast reshape
    mu = head[:, 0:H]
    logvar = head[:, H:2 * H]
    return out, mu, logvar


# ----------------------------------------------------------------- params ---

def _uniform(key, shape, fan_in):
    bound = 1.0 / jnp.sqrt(jnp.float32(fan_in))
    return jax.random.uniform(key, shape, jnp.float32, -bound, bound)


def init_params(key, input_dim, hidden_dim, latent_dim):
    ks = jax.random.split(key, 16)
    H, D, L = hidden_dim, input_dim, latent_dim
    p = {}
    # GRU, stored transposed (in, 3H), PyTorch gate order [r | z | n].
    p["gru_wih_t"] = _uniform(ks[0], (D, 3 * H), H)
    p["gru_whh_t"] = _uniform(ks[1], (H, 3 * H), H)
    p["gru_bih"] = _uniform(ks[2], (1, 3 * H), H)
    p["gru_bhh"] = _uniform(ks[3], (1, 3 * H), H)
    # fc_mu and fc_logvar fused: columns [0:H] -> mu, [H:2H] -> logvar.
    p["wml_t"] = _uniform(ks[4], (H, 2 * H), H)
    p["bml"] = _uniform(ks[5], (1, 2 * H), H)
    # g : H -> L
    p["wg_t"] = _uniform(ks[8], (H, L), H)
    p["bg"] = _uniform(ks[9], (1, L), H)
    # ODE func: L -> L -> L
    p["ode_w1_t"] = _uniform(ks[10], (L, L), L)
    p["ode_b1"] = _uniform(ks[11], (1, L), L)
    p["ode_w2_t"] = _uniform(ks[12], (L, L), L)
    p["ode_b2"] = _uniform(ks[13], (1, L), L)
    # decoder: L -> D
    p["wd_t"] = _uniform(ks[14], (L, D), L)
    p["bd"] = _uniform(ks[15], (1, D), L)
    return p


# ------------------------------------------------------------------- main ---

if __name__ == "__main__":
    B, S, D_IN, HIDDEN, LATENT = 2, 8, 4, 32, 16
    N, M = 3, 2

    root = jax.random.PRNGKey(0)
    k_param, k_x, k_eps = jax.random.split(root, 3)

    params = init_params(k_param, D_IN, HIDDEN, LATENT)
    x = jax.random.normal(k_x, (B, S, D_IN), jnp.float32)

    fwd = jax.jit(functools.partial(predict_model_forward, params),
                  static_argnums=(1, 2))
    out, mu, logvar = fwd(x, N, M, k_eps)
    jax.block_until_ready((out, mu, logvar))

    assert out.shape == (B, N + M, D_IN)
    assert mu.shape == (B, HIDDEN)
    assert logvar.shape == (B, HIDDEN)
    assert bool(jnp.all(jnp.isfinite(out)))
    assert bool(jnp.all(jnp.isfinite(mu)))
    assert bool(jnp.all(jnp.isfinite(logvar)))
    print("KERNEL_OK")
</pallas_src>

<mosaic_0001>
module attributes {stable_mosaic.version = 11 : i64} {
  func.func @kernel(%arg0: memref<16x4xf32, #tpu.memory_space<vmem>>, %arg1: memref<2x32xf32, #tpu.memory_space<vmem>>, %arg2: memref<4x32xf32, #tpu.memory_space<vmem>>, %arg3: memref<4x32xf32, #tpu.memory_space<vmem>>, %arg4: memref<4x32xf32, #tpu.memory_space<vmem>>, %arg5: memref<1x32xf32, #tpu.memory_space<vmem>>, %arg6: memref<1x32xf32, #tpu.memory_space<vmem>>, %arg7: memref<1x32xf32, #tpu.memory_space<vmem>>, %arg8: memref<1x32xf32, #tpu.memory_space<vmem>>, %arg9: memref<32x96xf32, #tpu.memory_space<vmem>>, %arg10: memref<32x64xf32, #tpu.memory_space<vmem>>, %arg11: memref<1x64xf32, #tpu.memory_space<vmem>>, %arg12: memref<32x16xf32, #tpu.memory_space<vmem>>, %arg13: memref<1x16xf32, #tpu.memory_space<vmem>>, %arg14: memref<16x16xf32, #tpu.memory_space<vmem>>, %arg15: memref<1x16xf32, #tpu.memory_space<vmem>>, %arg16: memref<16x16xf32, #tpu.memory_space<vmem>>, %arg17: memref<1x16xf32, #tpu.memory_space<vmem>>, %arg18: memref<80x20xf32, #tpu.memory_space<vmem>>, %arg19: memref<1x20xf32, #tpu.memory_space<vmem>>, %arg20: memref<2x20xf32, #tpu.memory_space<vmem>>, %arg21: memref<2x64xf32, #tpu.memory_space<vmem>>, %arg22: memref<2x80xf32, #tpu.memory_space<vmem>>) attributes {dimension_semantics = [], scalar_prefetch = 0 : i64, scratch_operands = 1 : i64, tpu.core_type = #tpu.core_type<tc>} {
    %c0 = arith.constant 0 : index
    %c0_0 = arith.constant 0 : index
    %0 = vector.load %arg2[%c0, %c0_0] : memref<4x32xf32, #tpu.memory_space<vmem>>, vector<4x32xf32>
    %c0_1 = arith.constant 0 : index
    %c0_2 = arith.constant 0 : index
    %1 = vector.load %arg3[%c0_1, %c0_2] : memref<4x32xf32, #tpu.memory_space<vmem>>, vector<4x32xf32>
    %c0_3 = arith.constant 0 : index
    %c0_4 = arith.constant 0 : index
    %2 = vector.load %arg4[%c0_3, %c0_4] : memref<4x32xf32, #tpu.memory_space<vmem>>, vector<4x32xf32>
    %c0_5 = arith.constant 0 : index
    %c0_6 = arith.constant 0 : index
    %3 = vector.load %arg5[%c0_5, %c0_6] : memref<1x32xf32, #tpu.memory_space<vmem>>, vector<1x32xf32>
    %c0_7 = arith.constant 0 : index
    %c0_8 = arith.constant 0 : index
    %4 = vector.load %arg6[%c0_7, %c0_8] : memref<1x32xf32, #tpu.memory_space<vmem>>, vector<1x32xf32>
    %c0_9 = arith.constant 0 : index
    %c0_10 = arith.constant 0 : index
    %5 = vector.load %arg7[%c0_9, %c0_10] : memref<1x32xf32, #tpu.memory_space<vmem>>, vector<1x32xf32>
    %c0_11 = arith.constant 0 : index
    %c0_12 = arith.constant 0 : index
    %6 = vector.load %arg8[%c0_11, %c0_12] : memref<1x32xf32, #tpu.memory_space<vmem>>, vector<1x32xf32>
    %c0_13 = arith.constant 0 : index
    %c0_14 = arith.constant 0 : index
    %7 = vector.load %arg9[%c0_13, %c0_14] : memref<32x96xf32, #tpu.memory_space<vmem>>, vector<32x96xf32>
    %c0_15 = arith.constant 0 : index
    %c0_16 = arith.constant 0 : index
    %8 = vector.load %arg10[%c0_15, %c0_16] : memref<32x64xf32, #tpu.memory_space<vmem>>, vector<32x64xf32>
    %c0_17 = arith.constant 0 : index
    %c0_18 = arith.constant 0 : index
    %9 = vector.load %arg11[%c0_17, %c0_18] : memref<1x64xf32, #tpu.memory_space<vmem>>, vector<1x64xf32>
    %c0_19 = arith.constant 0 : index
    %c0_20 = arith.constant 0 : index
    %10 = vector.load %arg12[%c0_19, %c0_20] : memref<32x16xf32, #tpu.memory_space<vmem>>, vector<32x16xf32>
    %c0_21 = arith.constant 0 : index
    %c0_22 = arith.constant 0 : index
    %11 = vector.load %arg13[%c0_21, %c0_22] : memref<1x16xf32, #tpu.memory_space<vmem>>, vector<1x16xf32>
    %c0_23 = arith.constant 0 : index
    %c0_24 = arith.constant 0 : index
    %12 = vector.load %arg14[%c0_23, %c0_24] : memref<16x16xf32, #tpu.memory_space<vmem>>, vector<16x16xf32>
    %c0_25 = arith.constant 0 : index
    %c0_26 = arith.constant 0 : index
    %13 = vector.load %arg15[%c0_25, %c0_26] : memref<1x16xf32, #tpu.memory_space<vmem>>, vector<1x16xf32>
    %c0_27 = arith.constant 0 : index
    %c0_28 = arith.constant 0 : index
    %14 = vector.load %arg16[%c0_27, %c0_28] : memref<16x16xf32, #tpu.memory_space<vmem>>, vector<16x16xf32>
    %c0_29 = arith.constant 0 : index
    %c0_30 = arith.constant 0 : index
    %15 = vector.load %arg17[%c0_29, %c0_30] : memref<1x16xf32, #tpu.memory_space<vmem>>, vector<1x16xf32>
    %c0_31 = arith.constant 0 : index
    %c0_32 = arith.constant 0 : index
    %16 = vector.load %arg18[%c0_31, %c0_32] : memref<80x20xf32, #tpu.memory_space<vmem>>, vector<80x20xf32>
    %c0_33 = arith.constant 0 : index
    %c0_34 = arith.constant 0 : index
    %17 = vector.load %arg19[%c0_33, %c0_34] : memref<1x20xf32, #tpu.memory_space<vmem>>, vector<1x20xf32>
    %c0_35 = arith.constant 0 : index
    %c0_36 = arith.constant 0 : index
    %18 = vector.load %arg0[%c0_35, %c0_36] : memref<16x4xf32, #tpu.memory_space<vmem>>, vector<16x4xf32>
    %cst = arith.constant dense<0.000000e+00> : vector<16x32xf32>
    %19 = tpu.matmul %18, %0, %cst {dimension_numbers = #tpu.dot_dimension_numbers<[1], [0], [0], [1], [0, 0, 1, 1], [], []>} : vector<16x4xf32>, vector<4x32xf32>, vector<16x32xf32> -> vector<16x32xf32>
    %20 = vector.broadcast %3 : vector<1x32xf32> to vector<16x32xf32>
    %21 = arith.addf %19, %20 : vector<16x32xf32>
    %cst_37 = arith.constant dense<0.000000e+00> : vector<16x32xf32>
    %22 = tpu.matmul %18, %1, %cst_37 {dimension_numbers = #tpu.dot_dimension_numbers<[1], [0], [0], [1], [0, 0, 1, 1], [], []>} : vector<16x4xf32>, vector<4x32xf32>, vector<16x32xf32> -> vector<16x32xf32>
    %23 = vector.broadcast %4 : vector<1x32xf32> to vector<16x32xf32>
    %24 = arith.addf %22, %23 : vector<16x32xf32>
    %cst_38 = arith.constant dense<0.000000e+00> : vector<16x32xf32>
    %25 = tpu.matmul %18, %2, %cst_38 {dimension_numbers = #tpu.dot_dimension_numbers<[1], [0], [0], [1], [0, 0, 1, 1], [], []>} : vector<16x4xf32>, vector<4x32xf32>, vector<16x32xf32> -> vector<16x32xf32>
    %26 = vector.broadcast %5 : vector<1x32xf32> to vector<16x32xf32>
    %27 = arith.addf %25, %26 : vector<16x32xf32>
    %cst_39 = arith.constant 0.000000e+00 : f32
    %28 = vector.broadcast %cst_39 : f32 to vector<2x32xf32>
    %29 = vector.extract_strided_slice %21 {offsets = [0, 0], sizes = [2, 32], strides = [1, 1]} : vector<16x32xf32> to vector<2x32xf32>
    %30 = vector.extract_strided_slice %24 {offsets = [0, 0], sizes = [2, 32], strides = [1, 1]} : vector<16x32xf32> to vector<2x32xf32>
    %31 = vector.extract_strided_slice %27 {offsets = [0, 0], sizes = [2, 32], strides = [1, 1]} : vector<16x32xf32> to vector<2x32xf32>
    %cst_40 = arith.constant dense<0.000000e+00> : vector<2x96xf32>
    %32 = tpu.matmul %28, %7, %cst_40 {dimension_numbers = #tpu.dot_dimension_numbers<[1], [0], [0], [1], [0, 0, 1, 1], [], []>} : vector<2x32xf32>, vector<32x96xf32>, vector<2x96xf32> -> vector<2x96xf32>
    %33 = vector.extract_strided_slice %32 {offsets = [0, 0], sizes = [2, 32], strides = [1, 1]} : vector<2x96xf32> to vector<2x32xf32>
    %34 = arith.addf %29, %33 : vector<2x32xf32>
    %35 = arith.negf %34 : vector<2x32xf32>
    %36 = math.exp %35 : vector<2x32xf32>
    %cst_41 = arith.constant 1.000000e+00 : f32
    %37 = vector.broadcast %cst_41 : f32 to vector<2x32xf32>
    %38 = arith.addf %37, %36 : vector<2x32xf32>
    %39 = arith.divf %37, %38 : vector<2x32xf32>
    %40 = vector.extract_strided_slice %32 {offsets = [0, 32], sizes = [2, 32], strides = [1, 1]} : vector<2x96xf32> to vector<2x32xf32>
    %41 = arith.addf %30, %40 : vector<2x32xf32>
    %42 = arith.negf %41 : vector<2x32xf32>
    %43 = math.exp %42 : vector<2x32xf32>
    %cst_42 = arith.constant 1.000000e+00 : f32
    %44 = vector.broadcast %cst_42 : f32 to vector<2x32xf32>
    %45 = arith.addf %44, %43 : vector<2x32xf32>
    %46 = arith.divf %44, %45 : vector<2x32xf32>
    %47 = vector.extract_strided_slice %32 {offsets = [0, 64], sizes = [2, 32], strides = [1, 1]} : vector<2x96xf32> to vector<2x32xf32>
    %48 = vector.broadcast %6 : vector<1x32xf32> to vector<2x32xf32>
    %49 = arith.addf %47, %48 : vector<2x32xf32>
    %50 = arith.mulf %39, %49 : vector<2x32xf32>
    %51 = arith.addf %31, %50 : vector<2x32xf32>
    %52 = math.tanh %51 : vector<2x32xf32>
    %cst_43 = arith.constant 1.000000e+00 : f32
    %53 = vector.broadcast %cst_43 : f32 to vector<2x32xf32>
    %54 = arith.subf %53, %46 : vector<2x32xf32>
    %55 = arith.mulf %54, %52 : vector<2x32xf32>
    %56 = arith.mulf %46, %28 : vector<2x32xf32>
    %57 = arith.addf %55, %56 : vector<2x32xf32>
    %58 = vector.extract_strided_slice %21 {offsets = [2, 0], sizes = [2, 32], strides = [1, 1]} : vector<16x32xf32> to vector<2x32xf32>
    %59 = vector.extract_strided_slice %24 {offsets = [2, 0], sizes = [2, 32], strides = [1, 1]} : vector<16x32xf32> to vector<2x32xf32>
    %60 = vector.extract_strided_slice %27 {offsets = [2, 0], sizes = [2, 32], strides = [1, 1]} : vector<16x32xf32> to vector<2x32xf32>
    %cst_44 = arith.constant dense<0.000000e+00> : vector<2x96xf32>
    %61 = tpu.matmul %57, %7, %cst_44 {dimension_numbers = #tpu.dot_dimension_numbers<[1], [0], [0], [1], [0, 0, 1, 1], [], []>} : vector<2x32xf32>, vector<32x96xf32>, vector<2x96xf32> -> vector<2x96xf32>
    %62 = vector.extract_strided_slice %61 {offsets = [0, 0], sizes = [2, 32], strides = [1, 1]} : vector<2x96xf32> to vector<2x32xf32>
    %63 = arith.addf %58, %62 : vector<2x32xf32>
    %64 = arith.negf %63 : vector<2x32xf32>
    %65 = math.exp %64 : vector<2x32xf32>
    %cst_45 = arith.constant 1.000000e+00 : f32
    %66 = vector.broadcast %cst_45 : f32 to vector<2x32xf32>
    %67 = arith.addf %66, %65 : vector<2x32xf32>
    %68 = arith.divf %66, %67 : vector<2x32xf32>
    %69 = vector.extract_strided_slice %61 {offsets = [0, 32], sizes = [2, 32], strides = [1, 1]} : vector<2x96xf32> to vector<2x32xf32>
    %70 = arith.addf %59, %69 : vector<2x32xf32>
    %71 = arith.negf %70 : vector<2x32xf32>
    %72 = math.exp %71 : vector<2x32xf32>
    %cst_46 = arith.constant 1.000000e+00 : f32
    %73 = vector.broadcast %cst_46 : f32 to vector<2x32xf32>
    %74 = arith.addf %73, %72 : vector<2x32xf32>
    %75 = arith.divf %73, %74 : vector<2x32xf32>
    %76 = vector.extract_strided_slice %61 {offsets = [0, 64], sizes = [2, 32], strides = [1, 1]} : vector<2x96xf32> to vector<2x32xf32>
    %77 = vector.broadcast %6 : vector<1x32xf32> to vector<2x32xf32>
    %78 = arith.addf %76, %77 : vector<2x32xf32>
    %79 = arith.mulf %68, %78 : vector<2x32xf32>
    %80 = arith.addf %60, %79 : vector<2x32xf32>
    %81 = math.tanh %80 : vector<2x32xf32>
    %cst_47 = arith.constant 1.000000e+00 : f32
    %82 = vector.broadcast %cst_47 : f32 to vector<2x32xf32>
    %83 = arith.subf %82, %75 : vector<2x32xf32>
    %84 = arith.mulf %83, %81 : vector<2x32xf32>
    %85 = arith.mulf %75, %57 : vector<2x32xf32>
    %86 = arith.addf %84, %85 : vector<2x32xf32>
    %87 = vector.extract_strided_slice %21 {offsets = [4, 0], sizes = [2, 32], strides = [1, 1]} : vector<16x32xf32> to vector<2x32xf32>
    %88 = vector.extract_strided_slice %24 {offsets = [4, 0], sizes = [2, 32], strides = [1, 1]} : vector<16x32xf32> to vector<2x32xf32>
    %89 = vector.extract_strided_slice %27 {offsets = [4, 0], sizes = [2, 32], strides = [1, 1]} : vector<16x32xf32> to vector<2x32xf32>
    %cst_48 = arith.constant dense<0.000000e+00> : vector<2x96xf32>
    %90 = tpu.matmul %86, %7, %cst_48 {dimension_numbers = #tpu.dot_dimension_numbers<[1], [0], [0], [1], [0, 0, 1, 1], [], []>} : vector<2x32xf32>, vector<32x96xf32>, vector<2x96xf32> -> vector<2x96xf32>
    %91 = vector.extract_strided_slice %90 {offsets = [0, 0], sizes = [2, 32], strides = [1, 1]} : vector<2x96xf32> to vector<2x32xf32>
    %92 = arith.addf %87, %91 : vector<2x32xf32>
    %93 = arith.negf %92 : vector<2x32xf32>
    %94 = math.exp %93 : vector<2x32xf32>
    %cst_49 = arith.constant 1.000000e+00 : f32
    %95 = vector.broadcast %cst_49 : f32 to vector<2x32xf32>
    %96 = arith.addf %95, %94 : vector<2x32xf32>
    %97 = arith.divf %95, %96 : vector<2x32xf32>
    %98 = vector.extract_strided_slice %90 {offsets = [0, 32], sizes = [2, 32], strides = [1, 1]} : vector<2x96xf32> to vector<2x32xf32>
    %99 = arith.addf %88, %98 : vector<2x32xf32>
    %100 = arith.negf %99 : vector<2x32xf32>
    %101 = math.exp %100 : vector<2x32xf32>
    %cst_50 = arith.constant 1.000000e+00 : f32
    %102 = vector.broadcast %cst_50 : f32 to vector<2x32xf32>
    %103 = arith.addf %102, %101 : vector<2x32xf32>
    %104 = arith.divf %102, %103 : vector<2x32xf32>
    %105 = vector.extract_strided_slice %90 {offsets = [0, 64], sizes = [2, 32], strides = [1, 1]} : vector<2x96xf32> to vector<2x32xf32>
    %106 = vector.broadcast %6 : vector<1x32xf32> to vector<2x32xf32>
    %107 = arith.addf %105, %106 : vector<2x32xf32>
    %108 = arith.mulf %97, %107 : vector<2x32xf32>
    %109 = arith.addf %89, %108 : vector<2x32xf32>
    %110 = math.tanh %109 : vector<2x32xf32>
    %cst_51 = arith.constant 1.000000e+00 : f32
    %111 = vector.broadcast %cst_51 : f32 to vector<2x32xf32>
    %112 = arith.subf %111, %104 : vector<2x32xf32>
    %113 = arith.mulf %112, %110 : vector<2x32xf32>
    %114 = arith.mulf %104, %86 : vector<2x32xf32>
    %115 = arith.addf %113, %114 : vector<2x32xf32>
    %116 = vector.extract_strided_slice %21 {offsets = [6, 0], sizes = [2, 32], strides = [1, 1]} : vector<16x32xf32> to vector<2x32xf32>
    %117 = vector.extract_strided_slice %24 {offsets = [6, 0], sizes = [2, 32], strides = [1, 1]} : vector<16x32xf32> to vector<2x32xf32>
    %118 = vector.extract_strided_slice %27 {offsets = [6, 0], sizes = [2, 32], strides = [1, 1]} : vector<16x32xf32> to vector<2x32xf32>
    %cst_52 = arith.constant dense<0.000000e+00> : vector<2x96xf32>
    %119 = tpu.matmul %115, %7, %cst_52 {dimension_numbers = #tpu.dot_dimension_numbers<[1], [0], [0], [1], [0, 0, 1, 1], [], []>} : vector<2x32xf32>, vector<32x96xf32>, vector<2x96xf32> -> vector<2x96xf32>
    %120 = vector.extract_strided_slice %119 {offsets = [0, 0], sizes = [2, 32], strides = [1, 1]} : vector<2x96xf32> to vector<2x32xf32>
    %121 = arith.addf %116, %120 : vector<2x32xf32>
    %122 = arith.negf %121 : vector<2x32xf32>
    %123 = math.exp %122 : vector<2x32xf32>
    %cst_53 = arith.constant 1.000000e+00 : f32
    %124 = vector.broadcast %cst_53 : f32 to vector<2x32xf32>
    %125 = arith.addf %124, %123 : vector<2x32xf32>
    %126 = arith.divf %124, %125 : vector<2x32xf32>
    %127 = vector.extract_strided_slice %119 {offsets = [0, 32], sizes = [2, 32], strides = [1, 1]} : vector<2x96xf32> to vector<2x32xf32>
    %128 = arith.addf %117, %127 : vector<2x32xf32>
    %129 = arith.negf %128 : vector<2x32xf32>
    %130 = math.exp %129 : vector<2x32xf32>
    %cst_54 = arith.constant 1.000000e+00 : f32
    %131 = vector.broadcast %cst_54 : f32 to vector<2x32xf32>
    %132 = arith.addf %131, %130 : vector<2x32xf32>
    %133 = arith.divf %131, %132 : vector<2x32xf32>
    %134 = vector.extract_strided_slice %119 {offsets = [0, 64], sizes = [2, 32], strides = [1, 1]} : vector<2x96xf32> to vector<2x32xf32>
    %135 = vector.broadcast %6 : vector<1x32xf32> to vector<2x32xf32>
    %136 = arith.addf %134, %135 : vector<2x32xf32>
    %137 = arith.mulf %126, %136 : vector<2x32xf32>
    %138 = arith.addf %118, %137 : vector<2x32xf32>
    %139 = math.tanh %138 : vector<2x32xf32>
    %cst_55 = arith.constant 1.000000e+00 : f32
    %140 = vector.broadcast %cst_55 : f32 to vector<2x32xf32>
    %141 = arith.subf %140, %133 : vector<2x32xf32>
    %142 = arith.mulf %141, %139 : vector<2x32xf32>
    %143 = arith.mulf %133, %115 : vector<2x32xf32>
    %144 = arith.addf %142, %143 : vector<2x32xf32>
    %145 = vector.extract_strided_slice %21 {offsets = [8, 0], sizes = [2, 32], strides = [1, 1]} : vector<16x32xf32> to vector<2x32xf32>
    %146 = vector.extract_strided_slice %24 {offsets = [8, 0], sizes = [2, 32], strides = [1, 1]} : vector<16x32xf32> to vector<2x32xf32>
    %147 = vector.extract_strided_slice %27 {offsets = [8, 0], sizes = [2, 32], strides = [1, 1]} : vector<16x32xf32> to vector<2x32xf32>
    %cst_56 = arith.constant dense<0.000000e+00> : vector<2x96xf32>
    %148 = tpu.matmul %144, %7, %cst_56 {dimension_numbers = #tpu.dot_dimension_numbers<[1], [0], [0], [1], [0, 0, 1, 1], [], []>} : vector<2x32xf32>, vector<32x96xf32>, vector<2x96xf32> -> vector<2x96xf32>
    %149 = vector.extract_strided_slice %148 {offsets = [0, 0], sizes = [2, 32], strides = [1, 1]} : vector<2x96xf32> to vector<2x32xf32>
    %150 = arith.addf %145, %149 : vector<2x32xf32>
    %151 = arith.negf %150 : vector<2x32xf32>
    %152 = math.exp %151 : vector<2x32xf32>
    %cst_57 = arith.constant 1.000000e+00 : f32
    %153 = vector.broadcast %cst_57 : f32 to vector<2x32xf32>
    %154 = arith.addf %153, %152 : vector<2x32xf32>
    %155 = arith.divf %153, %154 : vector<2x32xf32>
    %156 = vector.extract_strided_slice %148 {offsets = [0, 32], sizes = [2, 32], strides = [1, 1]} : vector<2x96xf32> to vector<2x32xf32>
    %157 = arith.addf %146, %156 : vector<2x32xf32>
    %158 = arith.negf %157 : vector<2x32xf32>
    %159 = math.exp %158 : vector<2x32xf32>
    %cst_58 = arith.constant 1.000000e+00 : f32
    %160 = vector.broadcast %cst_58 : f32 to vector<2x32xf32>
    %161 = arith.addf %160, %159 : vector<2x32xf32>
    %162 = arith.divf %160, %161 : vector<2x32xf32>
    %163 = vector.extract_strided_slice %148 {offsets = [0, 64], sizes = [2, 32], strides = [1, 1]} : vector<2x96xf32> to vector<2x32xf32>
    %164 = vector.broadcast %6 : vector<1x32xf32> to vector<2x32xf32>
    %165 = arith.addf %163, %164 : vector<2x32xf32>
    %166 = arith.mulf %155, %165 : vector<2x32xf32>
    %167 = arith.addf %147, %166 : vector<2x32xf32>
    %168 = math.tanh %167 : vector<2x32xf32>
    %cst_59 = arith.constant 1.000000e+00 : f32
    %169 = vector.broadcast %cst_59 : f32 to vector<2x32xf32>
    %170 = arith.subf %169, %162 : vector<2x32xf32>
    %171 = arith.mulf %170, %168 : vector<2x32xf32>
    %172 = arith.mulf %162, %144 : vector<2x32xf32>
    %173 = arith.addf %171, %172 : vector<2x32xf32>
    %174 = vector.extract_strided_slice %21 {offsets = [10, 0], sizes = [2, 32], strides = [1, 1]} : vector<16x32xf32> to vector<2x32xf32>
    %175 = vector.extract_strided_slice %24 {offsets = [10, 0], sizes = [2, 32], strides = [1, 1]} : vector<16x32xf32> to vector<2x32xf32>
    %176 = vector.extract_strided_slice %27 {offsets = [10, 0], sizes = [2, 32], strides = [1, 1]} : vector<16x32xf32> to vector<2x32xf32>
    %cst_60 = arith.constant dense<0.000000e+00> : vector<2x96xf32>
    %177 = tpu.matmul %173, %7, %cst_60 {dimension_numbers = #tpu.dot_dimension_numbers<[1], [0], [0], [1], [0, 0, 1, 1], [], []>} : vector<2x32xf32>, vector<32x96xf32>, vector<2x96xf32> -> vector<2x96xf32>
    %178 = vector.extract_strided_slice %177 {offsets = [0, 0], sizes = [2, 32], strides = [1, 1]} : vector<2x96xf32> to vector<2x32xf32>
    %179 = arith.addf %174, %178 : vector<2x32xf32>
    %180 = arith.negf %179 : vector<2x32xf32>
    %181 = math.exp %180 : vector<2x32xf32>
    %cst_61 = arith.constant 1.000000e+00 : f32
    %182 = vector.broadcast %cst_61 : f32 to vector<2x32xf32>
    %183 = arith.addf %182, %181 : vector<2x32xf32>
    %184 = arith.divf %182, %183 : vector<2x32xf32>
    %185 = vector.extract_strided_slice %177 {offsets = [0, 32], sizes = [2, 32], strides = [1, 1]} : vector<2x96xf32> to vector<2x32xf32>
    %186 = arith.addf %175, %185 : vector<2x32xf32>
    %187 = arith.negf %186 : vector<2x32xf32>
    %188 = math.exp %187 : vector<2x32xf32>
    %cst_62 = arith.constant 1.000000e+00 : f32
    %189 = vector.broadcast %cst_62 : f32 to vector<2x32xf32>
    %190 = arith.addf %189, %188 : vector<2x32xf32>
    %191 = arith.divf %189, %190 : vector<2x32xf32>
    %192 = vector.extract_strided_slice %177 {offsets = [0, 64], sizes = [2, 32], strides = [1, 1]} : vector<2x96xf32> to vector<2x32xf32>
    %193 = vector.broadcast %6 : vector<1x32xf32> to vector<2x32xf32>
    %194 = arith.addf %192, %193 : vector<2x32xf32>
    %195 = arith.mulf %184, %194 : vector<2x32xf32>
    %196 = arith.addf %176, %195 : vector<2x32xf32>
    %197 = math.tanh %196 : vector<2x32xf32>
    %cst_63 = arith.constant 1.000000e+00 : f32
    %198 = vector.broadcast %cst_63 : f32 to vector<2x32xf32>
    %199 = arith.subf %198, %191 : vector<2x32xf32>
    %200 = arith.mulf %199, %197 : vector<2x32xf32>
    %201 = arith.mulf %191, %173 : vector<2x32xf32>
    %202 = arith.addf %200, %201 : vector<2x32xf32>
    %203 = vector.extract_strided_slice %21 {offsets = [12, 0], sizes = [2, 32], strides = [1, 1]} : vector<16x32xf32> to vector<2x32xf32>
    %204 = vector.extract_strided_slice %24 {offsets = [12, 0], sizes = [2, 32], strides = [1, 1]} : vector<16x32xf32> to vector<2x32xf32>
    %205 = vector.extract_strided_slice %27 {offsets = [12, 0], sizes = [2, 32], strides = [1, 1]} : vector<16x32xf32> to vector<2x32xf32>
    %cst_64 = arith.constant dense<0.000000e+00> : vector<2x96xf32>
    %206 = tpu.matmul %202, %7, %cst_64 {dimension_numbers = #tpu.dot_dimension_numbers<[1], [0], [0], [1], [0, 0, 1, 1], [], []>} : vector<2x32xf32>, vector<32x96xf32>, vector<2x96xf32> -> vector<2x96xf32>
    %207 = vector.extract_strided_slice %206 {offsets = [0, 0], sizes = [2, 32], strides = [1, 1]} : vector<2x96xf32> to vector<2x32xf32>
    %208 = arith.addf %203, %207 : vector<2x32xf32>
    %209 = arith.negf %208 : vector<2x32xf32>
    %210 = math.exp %209 : vector<2x32xf32>
    %cst_65 = arith.constant 1.000000e+00 : f32
    %211 = vector.broadcast %cst_65 : f32 to vector<2x32xf32>
    %212 = arith.addf %211, %210 : vector<2x32xf32>
    %213 = arith.divf %211, %212 : vector<2x32xf32>
    %214 = vector.extract_strided_slice %206 {offsets = [0, 32], sizes = [2, 32], strides = [1, 1]} : vector<2x96xf32> to vector<2x32xf32>
    %215 = arith.addf %204, %214 : vector<2x32xf32>
    %216 = arith.negf %215 : vector<2x32xf32>
    %217 = math.exp %216 : vector<2x32xf32>
    %cst_66 = arith.constant 1.000000e+00 : f32
    %218 = vector.broadcast %cst_66 : f32 to vector<2x32xf32>
    %219 = arith.addf %218, %217 : vector<2x32xf32>
    %220 = arith.divf %218, %219 : vector<2x32xf32>
    %221 = vector.extract_strided_slice %206 {offsets = [0, 64], sizes = [2, 32], strides = [1, 1]} : vector<2x96xf32> to vector<2x32xf32>
    %222 = vector.broadcast %6 : vector<1x32xf32> to vector<2x32xf32>
    %223 = arith.addf %221, %222 : vector<2x32xf32>
    %224 = arith.mulf %213, %223 : vector<2x32xf32>
    %225 = arith.addf %205, %224 : vector<2x32xf32>
    %226 = math.tanh %225 : vector<2x32xf32>
    %cst_67 = arith.constant 1.000000e+00 : f32
    %227 = vector.broadcast %cst_67 : f32 to vector<2x32xf32>
    %228 = arith.subf %227, %220 : vector<2x32xf32>
    %229 = arith.mulf %228, %226 : vector<2x32xf32>
    %230 = arith.mulf %220, %202 : vector<2x32xf32>
    %231 = arith.addf %229, %230 : vector<2x32xf32>
    %232 = vector.extract_strided_slice %21 {offsets = [14, 0], sizes = [2, 32], strides = [1, 1]} : vector<16x32xf32> to vector<2x32xf32>
    %233 = vector.extract_strided_slice %24 {offsets = [14, 0], sizes = [2, 32], strides = [1, 1]} : vector<16x32xf32> to vector<2x32xf32>
    %234 = vector.extract_strided_slice %27 {offsets = [14, 0], sizes = [2, 32], strides = [1, 1]} : vector<16x32xf32> to vector<2x32xf32>
    %cst_68 = arith.constant dense<0.000000e+00> : vector<2x96xf32>
    %235 = tpu.matmul %231, %7, %cst_68 {dimension_numbers = #tpu.dot_dimension_numbers<[1], [0], [0], [1], [0, 0, 1, 1], [], []>} : vector<2x32xf32>, vector<32x96xf32>, vector<2x96xf32> -> vector<2x96xf32>
    %236 = vector.extract_strided_slice %235 {offsets = [0, 0], sizes = [2, 32], strides = [1, 1]} : vector<2x96xf32> to vector<2x32xf32>
    %237 = arith.addf %232, %236 : vector<2x32xf32>
    %238 = arith.negf %237 : vector<2x32xf32>
    %239 = math.exp %238 : vector<2x32xf32>
    %cst_69 = arith.constant 1.000000e+00 : f32
    %240 = vector.broadcast %cst_69 : f32 to vector<2x32xf32>
    %241 = arith.addf %240, %239 : vector<2x32xf32>
    %242 = arith.divf %240, %241 : vector<2x32xf32>
    %243 = vector.extract_strided_slice %235 {offsets = [0, 32], sizes = [2, 32], strides = [1, 1]} : vector<2x96xf32> to vector<2x32xf32>
    %244 = arith.addf %233, %243 : vector<2x32xf32>
    %245 = arith.negf %244 : vector<2x32xf32>
    %246 = math.exp %245 : vector<2x32xf32>
    %cst_70 = arith.constant 1.000000e+00 : f32
    %247 = vector.broadcast %cst_70 : f32 to vector<2x32xf32>
    %248 = arith.addf %247, %246 : vector<2x32xf32>
    %249 = arith.divf %247, %248 : vector<2x32xf32>
    %250 = vector.extract_strided_slice %235 {offsets = [0, 64], sizes = [2, 32], strides = [1, 1]} : vector<2x96xf32> to vector<2x32xf32>
    %251 = vector.broadcast %6 : vector<1x32xf32> to vector<2x32xf32>
    %252 = arith.addf %250, %251 : vector<2x32xf32>
    %253 = arith.mulf %242, %252 : vector<2x32xf32>
    %254 = arith.addf %234, %253 : vector<2x32xf32>
    %255 = math.tanh %254 : vector<2x32xf32>
    %cst_71 = arith.constant 1.000000e+00 : f32
    %256 = vector.broadcast %cst_71 : f32 to vector<2x32xf32>
    %257 = arith.subf %256, %249 : vector<2x32xf32>
    %258 = arith.mulf %257, %255 : vector<2x32xf32>
    %259 = arith.mulf %249, %231 : vector<2x32xf32>
    %260 = arith.addf %258, %259 : vector<2x32xf32>
    %cst_72 = arith.constant dense<0.000000e+00> : vector<2x64xf32>
    %261 = tpu.matmul %260, %8, %cst_72 {dimension_numbers = #tpu.dot_dimension_numbers<[1], [0], [0], [1], [0, 0, 1, 1], [], []>} : vector<2x32xf32>, vector<32x64xf32>, vector<2x64xf32> -> vector<2x64xf32>
    %262 = vector.broadcast %9 : vector<1x64xf32> to vector<2x64xf32>
    %263 = arith.addf %261, %262 : vector<2x64xf32>
    %c0_73 = arith.constant 0 : index
    %c0_74 = arith.constant 0 : index
    %264 = vector.load %arg21[%c0_73, %c0_74] : memref<2x64xf32, #tpu.memory_space<vmem>>, vector<2x64xf32>
    tpu.vector_store %arg21[%c0_73, %c0_74], %263 {strides = array<i32>} : memref<2x64xf32, #tpu.memory_space<vmem>>, vector<2x64xf32>,
    %265 = vector.extract_strided_slice %263 {offsets = [0, 0], sizes = [2, 32], strides = [1, 1]} : vector<2x64xf32> to vector<2x32xf32>
    %266 = vector.extract_strided_slice %263 {offsets = [0, 32], sizes = [2, 32], strides = [1, 1]} : vector<2x64xf32> to vector<2x32xf32>
    %cst_75 = arith.constant 5.000000e-01 : f32
    %267 = vector.broadcast %cst_75 : f32 to vector<2x32xf32>
    %268 = arith.mulf %267, %266 : vector<2x32xf32>
    %269 = math.exp %268 : vector<2x32xf32>
    %c0_76 = arith.constant 0 : index
    %c0_77 = arith.constant 0 : index
    %270 = vector.load %arg1[%c0_76, %c0_77] : memref<2x32xf32, #tpu.memory_space<vmem>>, vector<2x32xf32>
    %271 = arith.mulf %269, %270 : vector<2x32xf32>
    %272 = arith.addf %265, %271 : vector<2x32xf32>
    %cst_78 = arith.constant dense<0.000000e+00> : vector<2x16xf32>
    %273 = tpu.matmul %272, %10, %cst_78 {dimension_numbers = #tpu.dot_dimension_numbers<[1], [0], [0], [1], [0, 0, 1, 1], [], []>} : vector<2x32xf32>, vector<32x16xf32>, vector<2x16xf32> -> vector<2x16xf32>
    %274 = vector.broadcast %11 : vector<1x16xf32> to vector<2x16xf32>
    %275 = arith.addf %273, %274 : vector<2x16xf32>
    %c0_79 = arith.constant 0 : index
    %c0_80 = arith.constant 0 : index
    %276 = vector.load %arg22[%c0_79, %c0_80] : memref<2x80xf32, #tpu.memory_space<vmem>>, vector<2x16xf32>
    tpu.vector_store %arg22[%c0_79, %c0_80], %275 {strides = array<i32>} : memref<2x80xf32, #tpu.memory_space<vmem>>, vector<2x16xf32>,
    %c0_i32 = arith.constant 0 : i32
    %c8_i32 = arith.constant 8 : i32
    %277 = arith.addi %c0_i32, %c8_i32 : i32
    %c1_i32 = arith.constant 1 : i32
    %278 = scf.for %arg23 = %c0_i32 to %277 step %c1_i32 iter_args(%arg24 = %275) -> (vector<2x16xf32>)  : i32 {
      %cst_99 = arith.constant dense<0.000000e+00> : vector<2x16xf32>
      %294 = tpu.matmul %arg24, %12, %cst_99 {dimension_numbers = #tpu.dot_dimension_numbers<[1], [0], [0], [1], [0, 0, 1, 1], [], []>} : vector<2x16xf32>, vector<16x16xf32>, vector<2x16xf32> -> vector<2x16xf32>
      %295 = vector.broadcast %13 : vector<1x16xf32> to vector<2x16xf32>
      %296 = arith.addf %294, %295 : vector<2x16xf32>
      %cst_100 = arith.constant 0.000000e+00 : f32
      %297 = vector.broadcast %cst_100 : f32 to vector<2x16xf32>
      %298 = arith.maximumf %296, %297 : vector<2x16xf32>
      %299 = math.absf %296 : vector<2x16xf32>
      %cst_101 = arith.constant 0.000000e+00 : f32
      %300 = vector.broadcast %cst_101 : f32 to vector<2x16xf32>
      %301 = arith.subf %300, %299 : vector<2x16xf32>
      %302 = math.exp %301 : vector<2x16xf32>
      %303 = math.log1p %302 : vector<2x16xf32>
      %304 = arith.addf %298, %303 : vector<2x16xf32>
      %cst_102 = arith.constant dense<0.000000e+00> : vector<2x16xf32>
      %305 = tpu.matmul %304, %14, %cst_102 {dimension_numbers = #tpu.dot_dimension_numbers<[1], [0], [0], [1], [0, 0, 1, 1], [], []>} : vector<2x16xf32>, vector<16x16xf32>, vector<2x16xf32> -> vector<2x16xf32>
      %306 = vector.broadcast %15 : vector<1x16xf32> to vector<2x16xf32>
      %307 = arith.addf %305, %306 : vector<2x16xf32>
      %cst_103 = arith.constant 6.250000e-02 : f32
      %308 = vector.broadcast %cst_103 : f32 to vector<2x16xf32>
      %309 = arith.mulf %308, %307 : vector<2x16xf32>
      %310 = arith.addf %arg24, %309 : vector<2x16xf32>
      %cst_104 = arith.constant dense<0.000000e+00> : vector<2x16xf32>
      %311 = tpu.matmul %310, %12, %cst_104 {dimension_numbers = #tpu.dot_dimension_numbers<[1], [0], [0], [1], [0, 0, 1, 1], [], []>} : vector<2x16xf32>, vector<16x16xf32>, vector<2x16xf32> -> vector<2x16xf32>
      %312 = vector.broadcast %13 : vector<1x16xf32> to vector<2x16xf32>
      %313 = arith.addf %311, %312 : vector<2x16xf32>
      %cst_105 = arith.constant 0.000000e+00 : f32
      %314 = vector.broadcast %cst_105 : f32 to vector<2x16xf32>
      %315 = arith.maximumf %313, %314 : vector<2x16xf32>
      %316 = math.absf %313 : vector<2x16xf32>
      %cst_106 = arith.constant 0.000000e+00 : f32
      %317 = vector.broadcast %cst_106 : f32 to vector<2x16xf32>
      %318 = arith.subf %317, %316 : vector<2x16xf32>
      %319 = math.exp %318 : vector<2x16xf32>
      %320 = math.log1p %319 : vector<2x16xf32>
      %321 = arith.addf %315, %320 : vector<2x16xf32>
      %cst_107 = arith.constant dense<0.000000e+00> : vector<2x16xf32>
      %322 = tpu.matmul %321, %14, %cst_107 {dimension_numbers = #tpu.dot_dimension_numbers<[1], [0], [0], [1], [0, 0, 1, 1], [], []>} : vector<2x16xf32>, vector<16x16xf32>, vector<2x16xf32> -> vector<2x16xf32>
      %323 = vector.broadcast %15 : vector<1x16xf32> to vector<2x16xf32>
      %324 = arith.addf %322, %323 : vector<2x16xf32>
      %cst_108 = arith.constant 6.250000e-02 : f32
      %325 = vector.broadcast %cst_108 : f32 to vector<2x16xf32>
      %326 = arith.mulf %325, %324 : vector<2x16xf32>
      %327 = arith.addf %arg24, %326 : vector<2x16xf32>
      %cst_109 = arith.constant dense<0.000000e+00> : vector<2x16xf32>
      %328 = tpu.matmul %327, %12, %cst_109 {dimension_numbers = #tpu.dot_dimension_numbers<[1], [0], [0], [1], [0, 0, 1, 1], [], []>} : vector<2x16xf32>, vector<16x16xf32>, vector<2x16xf32> -> vector<2x16xf32>
      %329 = vector.broadcast %13 : vector<1x16xf32> to vector<2x16xf32>
      %330 = arith.addf %328, %329 : vector<2x16xf32>
      %cst_110 = arith.constant 0.000000e+00 : f32
      %331 = vector.broadcast %cst_110 : f32 to vector<2x16xf32>
      %332 = arith.maximumf %330, %331 : vector<2x16xf32>
      %333 = math.absf %330 : vector<2x16xf32>
      %cst_111 = arith.constant 0.000000e+00 : f32
      %334 = vector.broadcast %cst_111 : f32 to vector<2x16xf32>
      %335 = arith.subf %334, %333 : vector<2x16xf32>
      %336 = math.exp %335 : vector<2x16xf32>
      %337 = math.log1p %336 : vector<2x16xf32>
      %338 = arith.addf %332, %337 : vector<2x16xf32>
      %cst_112 = arith.constant dense<0.000000e+00> : vector<2x16xf32>
      %339 = tpu.matmul %338, %14, %cst_112 {dimension_numbers = #tpu.dot_dimension_numbers<[1], [0], [0], [1], [0, 0, 1, 1], [], []>} : vector<2x16xf32>, vector<16x16xf32>, vector<2x16xf32> -> vector<2x16xf32>
      %340 = vector.broadcast %15 : vector<1x16xf32> to vector<2x16xf32>
      %341 = arith.addf %339, %340 : vector<2x16xf32>
      %cst_113 = arith.constant 1.250000e-01 : f32
      %342 = vector.broadcast %cst_113 : f32 to vector<2x16xf32>
      %343 = arith.mulf %342, %341 : vector<2x16xf32>
      %344 = arith.addf %arg24, %343 : vector<2x16xf32>
      %cst_114 = arith.constant dense<0.000000e+00> : vector<2x16xf32>
      %345 = tpu.matmul %344, %12, %cst_114 {dimension_numbers = #tpu.dot_dimension_numbers<[1], [0], [0], [1], [0, 0, 1, 1], [], []>} : vector<2x16xf32>, vector<16x16xf32>, vector<2x16xf32> -> vector<2x16xf32>
      %346 = vector.broadcast %13 : vector<1x16xf32> to vector<2x16xf32>
      %347 = arith.addf %345, %346 : vector<2x16xf32>
      %cst_115 = arith.constant 0.000000e+00 : f32
      %348 = vector.broadcast %cst_115 : f32 to vector<2x16xf32>
      %349 = arith.maximumf %347, %348 : vector<2x16xf32>
      %350 = math.absf %347 : vector<2x16xf32>
      %cst_116 = arith.constant 0.000000e+00 : f32
      %351 = vector.broadcast %cst_116 : f32 to vector<2x16xf32>
      %352 = arith.subf %351, %350 : vector<2x16xf32>
      %353 = math.exp %352 : vector<2x16xf32>
      %354 = math.log1p %353 : vector<2x16xf32>
      %355 = arith.addf %349, %354 : vector<2x16xf32>
      %cst_117 = arith.constant dense<0.000000e+00> : vector<2x16xf32>
      %356 = tpu.matmul %355, %14, %cst_117 {dimension_numbers = #tpu.dot_dimension_numbers<[1], [0], [0], [1], [0, 0, 1, 1], [], []>} : vector<2x16xf32>, vector<16x16xf32>, vector<2x16xf32> -> vector<2x16xf32>
      %357 = vector.broadcast %15 : vector<1x16xf32> to vector<2x16xf32>
      %358 = arith.addf %356, %357 : vector<2x16xf32>
      %cst_118 = arith.constant 2.000000e+00 : f32
      %359 = vector.broadcast %cst_118 : f32 to vector<2x16xf32>
      %360 = arith.mulf %359, %324 : vector<2x16xf32>
      %361 = arith.addf %307, %360 : vector<2x16xf32>
      %cst_119 = arith.constant 2.000000e+00 : f32
      %362 = vector.broadcast %cst_119 : f32 to vector<2x16xf32>
      %363 = arith.mulf %362, %341 : vector<2x16xf32>
      %364 = arith.addf %361, %363 : vector<2x16xf32>
      %365 = arith.addf %364, %358 : vector<2x16xf32>
      %cst_120 = arith.constant 0.020833334 : f32
      %366 = vector.broadcast %cst_120 : f32 to vector<2x16xf32>
      %367 = arith.mulf %366, %365 : vector<2x16xf32>
      %368 = arith.addf %arg24, %367 : vector<2x16xf32>
      scf.yield %368 : vector<2x16xf32>
    }
    %c0_81 = arith.constant 0 : index
    %c16 = arith.constant 16 : index
    %279 = vector.load %arg22[%c0_81, %c16] : memref<2x80xf32, #tpu.memory_space<vmem>>, vector<2x16xf32>
    tpu.vector_store %arg22[%c0_81, %c16], %278 {strides = array<i32>} : memref<2x80xf32, #tpu.memory_space<vmem>>, vector<2x16xf32>,
    %c0_i32_82 = arith.constant 0 : i32
    %c8_i32_83 = arith.constant 8 : i32
    %280 = arith.addi %c0_i32_82, %c8_i32_83 : i32
    %c1_i32_84 = arith.constant 1 : i32
    %281 = scf.for %arg23 = %c0_i32_82 to %280 step %c1_i32_84 iter_args(%arg24 = %278) -> (vector<2x16xf32>)  : i32 {
      %cst_99 = arith.constant dense<0.000000e+00> : vector<2x16xf32>
      %294 = tpu.matmul %arg24, %12, %cst_99 {dimension_numbers = #tpu.dot_dimension_numbers<[1], [0], [0], [1], [0, 0, 1, 1], [], []>} : vector<2x16xf32>, vector<16x16xf32>, vector<2x16xf32> -> vector<2x16xf32>
      %295 = vector.broadcast %13 : vector<1x16xf32> to vector<2x16xf32>
      %296 = arith.addf %294, %295 : vector<2x16xf32>
      %cst_100 = arith.constant 0.000000e+00 : f32
      %297 = vector.broadcast %cst_100 : f32 to vector<2x16xf32>
      %298 = arith.maximumf %296, %297 : vector<2x16xf32>
      %299 = math.absf %296 : vector<2x16xf32>
      %cst_101 = arith.constant 0.000000e+00 : f32
      %300 = vector.broadcast %cst_101 : f32 to vector<2x16xf32>
      %301 = arith.subf %300, %299 : vector<2x16xf32>
      %302 = math.exp %301 : vector<2x16xf32>
      %303 = math.log1p %302 : vector<2x16xf32>
      %304 = arith.addf %298, %303 : vector<2x16xf32>
      %cst_102 = arith.constant dense<0.000000e+00> : vector<2x16xf32>
      %305 = tpu.matmul %304, %14, %cst_102 {dimension_numbers = #tpu.dot_dimension_numbers<[1], [0], [0], [1], [0, 0, 1, 1], [], []>} : vector<2x16xf32>, vector<16x16xf32>, vector<2x16xf32> -> vector<2x16xf32>
      %306 = vector.broadcast %15 : vector<1x16xf32> to vector<2x16xf32>
      %307 = arith.addf %305, %306 : vector<2x16xf32>
      %cst_103 = arith.constant 6.250000e-02 : f32
      %308 = vector.broadcast %cst_103 : f32 to vector<2x16xf32>
      %309 = arith.mulf %308, %307 : vector<2x16xf32>
      %310 = arith.addf %arg24, %309 : vector<2x16xf32>
      %cst_104 = arith.constant dense<0.000000e+00> : vector<2x16xf32>
      %311 = tpu.matmul %310, %12, %cst_104 {dimension_numbers = #tpu.dot_dimension_numbers<[1], [0], [0], [1], [0, 0, 1, 1], [], []>} : vector<2x16xf32>, vector<16x16xf32>, vector<2x16xf32> -> vector<2x16xf32>
      %312 = vector.broadcast %13 : vector<1x16xf32> to vector<2x16xf32>
      %313 = arith.addf %311, %312 : vector<2x16xf32>
      %cst_105 = arith.constant 0.000000e+00 : f32
      %314 = vector.broadcast %cst_105 : f32 to vector<2x16xf32>
      %315 = arith.maximumf %313, %314 : vector<2x16xf32>
      %316 = math.absf %313 : vector<2x16xf32>
      %cst_106 = arith.constant 0.000000e+00 : f32
      %317 = vector.broadcast %cst_106 : f32 to vector<2x16xf32>
      %318 = arith.subf %317, %316 : vector<2x16xf32>
      %319 = math.exp %318 : vector<2x16xf32>
      %320 = math.log1p %319 : vector<2x16xf32>
      %321 = arith.addf %315, %320 : vector<2x16xf32>
      %cst_107 = arith.constant dense<0.000000e+00> : vector<2x16xf32>
      %322 = tpu.matmul %321, %14, %cst_107 {dimension_numbers = #tpu.dot_dimension_numbers<[1], [0], [0], [1], [0, 0, 1, 1], [], []>} : vector<2x16xf32>, vector<16x16xf32>, vector<2x16xf32> -> vector<2x16xf32>
      %323 = vector.broadcast %15 : vector<1x16xf32> to vector<2x16xf32>
      %324 = arith.addf %322, %323 : vector<2x16xf32>
      %cst_108 = arith.constant 6.250000e-02 : f32
      %325 = vector.broadcast %cst_108 : f32 to vector<2x16xf32>
      %326 = arith.mulf %325, %324 : vector<2x16xf32>
      %327 = arith.addf %arg24, %326 : vector<2x16xf32>
      %cst_109 = arith.constant dense<0.000000e+00> : vector<2x16xf32>
      %328 = tpu.matmul %327, %12, %cst_109 {dimension_numbers = #tpu.dot_dimension_numbers<[1], [0], [0], [1], [0, 0, 1, 1], [], []>} : vector<2x16xf32>, vector<16x16xf32>, vector<2x16xf32> -> vector<2x16xf32>
      %329 = vector.broadcast %13 : vector<1x16xf32> to vector<2x16xf32>
      %330 = arith.addf %328, %329 : vector<2x16xf32>
      %cst_110 = arith.constant 0.000000e+00 : f32
      %331 = vector.broadcast %cst_110 : f32 to vector<2x16xf32>
      %332 = arith.maximumf %330, %331 : vector<2x16xf32>
      %333 = math.absf %330 : vector<2x16xf32>
      %cst_111 = arith.constant 0.000000e+00 : f32
      %334 = vector.broadcast %cst_111 : f32 to vector<2x16xf32>
      %335 = arith.subf %334, %333 : vector<2x16xf32>
      %336 = math.exp %335 : vector<2x16xf32>
      %337 = math.log1p %336 : vector<2x16xf32>
      %338 = arith.addf %332, %337 : vector<2x16xf32>
      %cst_112 = arith.constant dense<0.000000e+00> : vector<2x16xf32>
      %339 = tpu.matmul %338, %14, %cst_112 {dimension_numbers = #tpu.dot_dimension_numbers<[1], [0], [0], [1], [0, 0, 1, 1], [], []>} : vector<2x16xf32>, vector<16x16xf32>, vector<2x16xf32> -> vector<2x16xf32>
      %340 = vector.broadcast %15 : vector<1x16xf32> to vector<2x16xf32>
      %341 = arith.addf %339, %340 : vector<2x16xf32>
      %cst_113 = arith.constant 1.250000e-01 : f32
      %342 = vector.broadcast %cst_113 : f32 to vector<2x16xf32>
      %343 = arith.mulf %342, %341 : vector<2x16xf32>
      %344 = arith.addf %arg24, %343 : vector<2x16xf32>
      %cst_114 = arith.constant dense<0.000000e+00> : vector<2x16xf32>
      %345 = tpu.matmul %344, %12, %cst_114 {dimension_numbers = #tpu.dot_dimension_numbers<[1], [0], [0], [1], [0, 0, 1, 1], [], []>} : vector<2x16xf32>, vector<16x16xf32>, vector<2x16xf32> -> vector<2x16xf32>
      %346 = vector.broadcast %13 : vector<1x16xf32> to vector<2x16xf32>
      %347 = arith.addf %345, %346 : vector<2x16xf32>
      %cst_115 = arith.constant 0.000000e+00 : f32
      %348 = vector.broadcast %cst_115 : f32 to vector<2x16xf32>
      %349 = arith.maximumf %347, %348 : vector<2x16xf32>
      %350 = math.absf %347 : vector<2x16xf32>
      %cst_116 = arith.constant 0.000000e+00 : f32
      %351 = vector.broadcast %cst_116 : f32 to vector<2x16xf32>
      %352 = arith.subf %351, %350 : vector<2x16xf32>
      %353 = math.exp %352 : vector<2x16xf32>
      %354 = math.log1p %353 : vector<2x16xf32>
      %355 = arith.addf %349, %354 : vector<2x16xf32>
      %cst_117 = arith.constant dense<0.000000e+00> : vector<2x16xf32>
      %356 = tpu.matmul %355, %14, %cst_117 {dimension_numbers = #tpu.dot_dimension_numbers<[1], [0], [0], [1], [0, 0, 1, 1], [], []>} : vector<2x16xf32>, vector<16x16xf32>, vector<2x16xf32> -> vector<2x16xf32>
      %357 = vector.broadcast %15 : vector<1x16xf32> to vector<2x16xf32>
      %358 = arith.addf %356, %357 : vector<2x16xf32>
      %cst_118 = arith.constant 2.000000e+00 : f32
      %359 = vector.broadcast %cst_118 : f32 to vector<2x16xf32>
      %360 = arith.mulf %359, %324 : vector<2x16xf32>
      %361 = arith.addf %307, %360 : vector<2x16xf32>
      %cst_119 = arith.constant 2.000000e+00 : f32
      %362 = vector.broadcast %cst_119 : f32 to vector<2x16xf32>
      %363 = arith.mulf %362, %341 : vector<2x16xf32>
      %364 = arith.addf %361, %363 : vector<2x16xf32>
      %365 = arith.addf %364, %358 : vector<2x16xf32>
      %cst_120 = arith.constant 0.020833334 : f32
      %366 = vector.broadcast %cst_120 : f32 to vector<2x16xf32>
      %367 = arith.mulf %366, %365 : vector<2x16xf32>
      %368 = arith.addf %arg24, %367 : vector<2x16xf32>
      scf.yield %368 : vector<2x16xf32>
    }
    %c0_85 = arith.constant 0 : index
    %c32 = arith.constant 32 : index
    %282 = vector.load %arg22[%c0_85, %c32] : memref<2x80xf32, #tpu.memory_space<vmem>>, vector<2x16xf32>
    tpu.vector_store %arg22[%c0_85, %c32], %281 {strides = array<i32>} : memref<2x80xf32, #tpu.memory_space<vmem>>, vector<2x16xf32>,
    %c0_i32_86 = arith.constant 0 : i32
    %c8_i32_87 = arith.constant 8 : i32
    %283 = arith.addi %c0_i32_86, %c8_i32_87 : i32
    %c1_i32_88 = arith.constant 1 : i32
    %284 = scf.for %arg23 = %c0_i32_86 to %283 step %c1_i32_88 iter_args(%arg24 = %281) -> (vector<2x16xf32>)  : i32 {
      %cst_99 = arith.constant dense<0.000000e+00> : vector<2x16xf32>
      %294 = tpu.matmul %arg24, %12, %cst_99 {dimension_numbers = #tpu.dot_dimension_numbers<[1], [0], [0], [1], [0, 0, 1, 1], [], []>} : vector<2x16xf32>, vector<16x16xf32>, vector<2x16xf32> -> vector<2x16xf32>
      %295 = vector.broadcast %13 : vector<1x16xf32> to vector<2x16xf32>
      %296 = arith.addf %294, %295 : vector<2x16xf32>
      %cst_100 = arith.constant 0.000000e+00 : f32
      %297 = vector.broadcast %cst_100 : f32 to vector<2x16xf32>
      %298 = arith.maximumf %296, %297 : vector<2x16xf32>
      %299 = math.absf %296 : vector<2x16xf32>
      %cst_101 = arith.constant 0.000000e+00 : f32
      %300 = vector.broadcast %cst_101 : f32 to vector<2x16xf32>
      %301 = arith.subf %300, %299 : vector<2x16xf32>
      %302 = math.exp %301 : vector<2x16xf32>
      %303 = math.log1p %302 : vector<2x16xf32>
      %304 = arith.addf %298, %303 : vector<2x16xf32>
      %cst_102 = arith.constant dense<0.000000e+00> : vector<2x16xf32>
      %305 = tpu.matmul %304, %14, %cst_102 {dimension_numbers = #tpu.dot_dimension_numbers<[1], [0], [0], [1], [0, 0, 1, 1], [], []>} : vector<2x16xf32>, vector<16x16xf32>, vector<2x16xf32> -> vector<2x16xf32>
      %306 = vector.broadcast %15 : vector<1x16xf32> to vector<2x16xf32>
      %307 = arith.addf %305, %306 : vector<2x16xf32>
      %cst_103 = arith.constant 6.250000e-02 : f32
      %308 = vector.broadcast %cst_103 : f32 to vector<2x16xf32>
      %309 = arith.mulf %308, %307 : vector<2x16xf32>
      %310 = arith.addf %arg24, %309 : vector<2x16xf32>
      %cst_104 = arith.constant dense<0.000000e+00> : vector<2x16xf32>
      %311 = tpu.matmul %310, %12, %cst_104 {dimension_numbers = #tpu.dot_dimension_numbers<[1], [0], [0], [1], [0, 0, 1, 1], [], []>} : vector<2x16xf32>, vector<16x16xf32>, vector<2x16xf32> -> vector<2x16xf32>
      %312 = vector.broadcast %13 : vector<1x16xf32> to vector<2x16xf32>
      %313 = arith.addf %311, %312 : vector<2x16xf32>
      %cst_105 = arith.constant 0.000000e+00 : f32
      %314 = vector.broadcast %cst_105 : f32 to vector<2x16xf32>
      %315 = arith.maximumf %313, %314 : vector<2x16xf32>
      %316 = math.absf %313 : vector<2x16xf32>
      %cst_106 = arith.constant 0.000000e+00 : f32
      %317 = vector.broadcast %cst_106 : f32 to vector<2x16xf32>
      %318 = arith.subf %317, %316 : vector<2x16xf32>
      %319 = math.exp %318 : vector<2x16xf32>
      %320 = math.log1p %319 : vector<2x16xf32>
      %321 = arith.addf %315, %320 : vector<2x16xf32>
      %cst_107 = arith.constant dense<0.000000e+00> : vector<2x16xf32>
      %322 = tpu.matmul %321, %14, %cst_107 {dimension_numbers = #tpu.dot_dimension_numbers<[1], [0], [0], [1], [0, 0, 1, 1], [], []>} : vector<2x16xf32>, vector<16x16xf32>, vector<2x16xf32> -> vector<2x16xf32>
      %323 = vector.broadcast %15 : vector<1x16xf32> to vector<2x16xf32>
      %324 = arith.addf %322, %323 : vector<2x16xf32>
      %cst_108 = arith.constant 6.250000e-02 : f32
      %325 = vector.broadcast %cst_108 : f32 to vector<2x16xf32>
      %326 = arith.mulf %325, %324 : vector<2x16xf32>
      %327 = arith.addf %arg24, %326 : vector<2x16xf32>
      %cst_109 = arith.constant dense<0.000000e+00> : vector<2x16xf32>
      %328 = tpu.matmul %327, %12, %cst_109 {dimension_numbers = #tpu.dot_dimension_numbers<[1], [0], [0], [1], [0, 0, 1, 1], [], []>} : vector<2x16xf32>, vector<16x16xf32>, vector<2x16xf32> -> vector<2x16xf32>
      %329 = vector.broadcast %13 : vector<1x16xf32> to vector<2x16xf32>
      %330 = arith.addf %328, %329 : vector<2x16xf32>
      %cst_110 = arith.constant 0.000000e+00 : f32
      %331 = vector.broadcast %cst_110 : f32 to vector<2x16xf32>
      %332 = arith.maximumf %330, %331 : vector<2x16xf32>
      %333 = math.absf %330 : vector<2x16xf32>
      %cst_111 = arith.constant 0.000000e+00 : f32
      %334 = vector.broadcast %cst_111 : f32 to vector<2x16xf32>
      %335 = arith.subf %334, %333 : vector<2x16xf32>
      %336 = math.exp %335 : vector<2x16xf32>
      %337 = math.log1p %336 : vector<2x16xf32>
      %338 = arith.addf %332, %337 : vector<2x16xf32>
      %cst_112 = arith.constant dense<0.000000e+00> : vector<2x16xf32>
      %339 = tpu.matmul %338, %14, %cst_112 {dimension_numbers = #tpu.dot_dimension_numbers<[1], [0], [0], [1], [0, 0, 1, 1], [], []>} : vector<2x16xf32>, vector<16x16xf32>, vector<2x16xf32> -> vector<2x16xf32>
      %340 = vector.broadcast %15 : vector<1x16xf32> to vector<2x16xf32>
      %341 = arith.addf %339, %340 : vector<2x16xf32>
      %cst_113 = arith.constant 1.250000e-01 : f32
      %342 = vector.broadcast %cst_113 : f32 to vector<2x16xf32>
      %343 = arith.mulf %342, %341 : vector<2x16xf32>
      %344 = arith.addf %arg24, %343 : vector<2x16xf32>
      %cst_114 = arith.constant dense<0.000000e+00> : vector<2x16xf32>
      %345 = tpu.matmul %344, %12, %cst_114 {dimension_numbers = #tpu.dot_dimension_numbers<[1], [0], [0], [1], [0, 0, 1, 1], [], []>} : vector<2x16xf32>, vector<16x16xf32>, vector<2x16xf32> -> vector<2x16xf32>
      %346 = vector.broadcast %13 : vector<1x16xf32> to vector<2x16xf32>
      %347 = arith.addf %345, %346 : vector<2x16xf32>
      %cst_115 = arith.constant 0.000000e+00 : f32
      %348 = vector.broadcast %cst_115 : f32 to vector<2x16xf32>
      %349 = arith.maximumf %347, %348 : vector<2x16xf32>
      %350 = math.absf %347 : vector<2x16xf32>
      %cst_116 = arith.constant 0.000000e+00 : f32
      %351 = vector.broadcast %cst_116 : f32 to vector<2x16xf32>
      %352 = arith.subf %351, %350 : vector<2x16xf32>
      %353 = math.exp %352 : vector<2x16xf32>
      %354 = math.log1p %353 : vector<2x16xf32>
      %355 = arith.addf %349, %354 : vector<2x16xf32>
      %cst_117 = arith.constant dense<0.000000e+00> : vector<2x16xf32>
      %356 = tpu.matmul %355, %14, %cst_117 {dimension_numbers = #tpu.dot_dimension_numbers<[1], [0], [0], [1], [0, 0, 1, 1], [], []>} : vector<2x16xf32>, vector<16x16xf32>, vector<2x16xf32> -> vector<2x16xf32>
      %357 = vector.broadcast %15 : vector<1x16xf32> to vector<2x16xf32>
      %358 = arith.addf %356, %357 : vector<2x16xf32>
      %cst_118 = arith.constant 2.000000e+00 : f32
      %359 = vector.broadcast %cst_118 : f32 to vector<2x16xf32>
      %360 = arith.mulf %359, %324 : vector<2x16xf32>
      %361 = arith.addf %307, %360 : vector<2x16xf32>
      %cst_119 = arith.constant 2.000000e+00 : f32
      %362 = vector.broadcast %cst_119 : f32 to vector<2x16xf32>
      %363 = arith.mulf %362, %341 : vector<2x16xf32>
      %364 = arith.addf %361, %363 : vector<2x16xf32>
      %365 = arith.addf %364, %358 : vector<2x16xf32>
      %cst_120 = arith.constant 0.020833334 : f32
      %366 = vector.broadcast %cst_120 : f32 to vector<2x16xf32>
      %367 = arith.mulf %366, %365 : vector<2x16xf32>
      %368 = arith.addf %arg24, %367 : vector<2x16xf32>
      scf.yield %368 : vector<2x16xf32>
    }
    %c0_89 = arith.constant 0 : index
    %c48 = arith.constant 48 : index
    %285 = vector.load %arg22[%c0_89, %c48] : memref<2x80xf32, #tpu.memory_space<vmem>>, vector<2x16xf32>
    tpu.vector_store %arg22[%c0_89, %c48], %284 {strides = array<i32>} : memref<2x80xf32, #tpu.memory_space<vmem>>, vector<2x16xf32>,
    %c0_i32_90 = arith.constant 0 : i32
    %c8_i32_91 = arith.constant 8 : i32
    %286 = arith.addi %c0_i32_90, %c8_i32_91 : i32
    %c1_i32_92 = arith.constant 1 : i32
    %287 = scf.for %arg23 = %c0_i32_90 to %286 step %c1_i32_92 iter_args(%arg24 = %284) -> (vector<2x16xf32>)  : i32 {
      %cst_99 = arith.constant dense<0.000000e+00> : vector<2x16xf32>
      %294 = tpu.matmul %arg24, %12, %cst_99 {dimension_numbers = #tpu.dot_dimension_numbers<[1], [0], [0], [1], [0, 0, 1, 1], [], []>} : vector<2x16xf32>, vector<16x16xf32>, vector<2x16xf32> -> vector<2x16xf32>
      %295 = vector.broadcast %13 : vector<1x16xf32> to vector<2x16xf32>
      %296 = arith.addf %294, %295 : vector<2x16xf32>
      %cst_100 = arith.constant 0.000000e+00 : f32
      %297 = vector.broadcast %cst_100 : f32 to vector<2x16xf32>
      %298 = arith.maximumf %296, %297 : vector<2x16xf32>
      %299 = math.absf %296 : vector<2x16xf32>
      %cst_101 = arith.constant 0.000000e+00 : f32
      %300 = vector.broadcast %cst_101 : f32 to vector<2x16xf32>
      %301 = arith.subf %300, %299 : vector<2x16xf32>
      %302 = math.exp %301 : vector<2x16xf32>
      %303 = math.log1p %302 : vector<2x16xf32>
      %304 = arith.addf %298, %303 : vector<2x16xf32>
      %cst_102 = arith.constant dense<0.000000e+00> : vector<2x16xf32>
      %305 = tpu.matmul %304, %14, %cst_102 {dimension_numbers = #tpu.dot_dimension_numbers<[1], [0], [0], [1], [0, 0, 1, 1], [], []>} : vector<2x16xf32>, vector<16x16xf32>, vector<2x16xf32> -> vector<2x16xf32>
      %306 = vector.broadcast %15 : vector<1x16xf32> to vector<2x16xf32>
      %307 = arith.addf %305, %306 : vector<2x16xf32>
      %cst_103 = arith.constant 6.250000e-02 : f32
      %308 = vector.broadcast %cst_103 : f32 to vector<2x16xf32>
      %309 = arith.mulf %308, %307 : vector<2x16xf32>
      %310 = arith.addf %arg24, %309 : vector<2x16xf32>
      %cst_104 = arith.constant dense<0.000000e+00> : vector<2x16xf32>
      %311 = tpu.matmul %310, %12, %cst_104 {dimension_numbers = #tpu.dot_dimension_numbers<[1], [0], [0], [1], [0, 0, 1, 1], [], []>} : vector<2x16xf32>, vector<16x16xf32>, vector<2x16xf32> -> vector<2x16xf32>
      %312 = vector.broadcast %13 : vector<1x16xf32> to vector<2x16xf32>
      %313 = arith.addf %311, %312 : vector<2x16xf32>
      %cst_105 = arith.constant 0.000000e+00 : f32
      %314 = vector.broadcast %cst_105 : f32 to vector<2x16xf32>
      %315 = arith.maximumf %313, %314 : vector<2x16xf32>
      %316 = math.absf %313 : vector<2x16xf32>
      %cst_106 = arith.constant 0.000000e+00 : f32
      %317 = vector.broadcast %cst_106 : f32 to vector<2x16xf32>
      %318 = arith.subf %317, %316 : vector<2x16xf32>
      %319 = math.exp %318 : vector<2x16xf32>
      %320 = math.log1p %319 : vector<2x16xf32>
      %321 = arith.addf %315, %320 : vector<2x16xf32>
      %cst_107 = arith.constant dense<0.000000e+00> : vector<2x16xf32>
      %322 = tpu.matmul %321, %14, %cst_107 {dimension_numbers = #tpu.dot_dimension_numbers<[1], [0], [0], [1], [0, 0, 1, 1], [], []>} : vector<2x16xf32>, vector<16x16xf32>, vector<2x16xf32> -> vector<2x16xf32>
      %323 = vector.broadcast %15 : vector<1x16xf32> to vector<2x16xf32>
      %324 = arith.addf %322, %323 : vector<2x16xf32>
      %cst_108 = arith.constant 6.250000e-02 : f32
      %325 = vector.broadcast %cst_108 : f32 to vector<2x16xf32>
      %326 = arith.mulf %325, %324 : vector<2x16xf32>
      %327 = arith.addf %arg24, %326 : vector<2x16xf32>
      %cst_109 = arith.constant dense<0.000000e+00> : vector<2x16xf32>
      %328 = tpu.matmul %327, %12, %cst_109 {dimension_numbers = #tpu.dot_dimension_numbers<[1], [0], [0], [1], [0, 0, 1, 1], [], []>} : vector<2x16xf32>, vector<16x16xf32>, vector<2x16xf32> -> vector<2x16xf32>
      %329 = vector.broadcast %13 : vector<1x16xf32> to vector<2x16xf32>
      %330 = arith.addf %328, %329 : vector<2x16xf32>
      %cst_110 = arith.constant 0.000000e+00 : f32
      %331 = vector.broadcast %cst_110 : f32 to vector<2x16xf32>
      %332 = arith.maximumf %330, %331 : vector<2x16xf32>
      %333 = math.absf %330 : vector<2x16xf32>
      %cst_111 = arith.constant 0.000000e+00 : f32
      %334 = vector.broadcast %cst_111 : f32 to vector<2x16xf32>
      %335 = arith.subf %334, %333 : vector<2x16xf32>
      %336 = math.exp %335 : vector<2x16xf32>
      %337 = math.log1p %336 : vector<2x16xf32>
      %338 = arith.addf %332, %337 : vector<2x16xf32>
      %cst_112 = arith.constant dense<0.000000e+00> : vector<2x16xf32>
      %339 = tpu.matmul %338, %14, %cst_112 {dimension_numbers = #tpu.dot_dimension_numbers<[1], [0], [0], [1], [0, 0, 1, 1], [], []>} : vector<2x16xf32>, vector<16x16xf32>, vector<2x16xf32> -> vector<2x16xf32>
      %340 = vector.broadcast %15 : vector<1x16xf32> to vector<2x16xf32>
      %341 = arith.addf %339, %340 : vector<2x16xf32>
      %cst_113 = arith.constant 1.250000e-01 : f32
      %342 = vector.broadcast %cst_113 : f32 to vector<2x16xf32>
      %343 = arith.mulf %342, %341 : vector<2x16xf32>
      %344 = arith.addf %arg24, %343 : vector<2x16xf32>
      %cst_114 = arith.constant dense<0.000000e+00> : vector<2x16xf32>
      %345 = tpu.matmul %344, %12, %cst_114 {dimension_numbers = #tpu.dot_dimension_numbers<[1], [0], [0], [1], [0, 0, 1, 1], [], []>} : vector<2x16xf32>, vector<16x16xf32>, vector<2x16xf32> -> vector<2x16xf32>
      %346 = vector.broadcast %13 : vector<1x16xf32> to vector<2x16xf32>
      %347 = arith.addf %345, %346 : vector<2x16xf32>
      %cst_115 = arith.constant 0.000000e+00 : f32
      %348 = vector.broadcast %cst_115 : f32 to vector<2x16xf32>
      %349 = arith.maximumf %347, %348 : vector<2x16xf32>
      %350 = math.absf %347 : vector<2x16xf32>
      %cst_116 = arith.constant 0.000000e+00 : f32
      %351 = vector.broadcast %cst_116 : f32 to vector<2x16xf32>
      %352 = arith.subf %351, %350 : vector<2x16xf32>
      %353 = math.exp %352 : vector<2x16xf32>
      %354 = math.log1p %353 : vector<2x16xf32>
      %355 = arith.addf %349, %354 : vector<2x16xf32>
      %cst_117 = arith.constant dense<0.000000e+00> : vector<2x16xf32>
      %356 = tpu.matmul %355, %14, %cst_117 {dimension_numbers = #tpu.dot_dimension_numbers<[1], [0], [0], [1], [0, 0, 1, 1], [], []>} : vector<2x16xf32>, vector<16x16xf32>, vector<2x16xf32> -> vector<2x16xf32>
      %357 = vector.broadcast %15 : vector<1x16xf32> to vector<2x16xf32>
      %358 = arith.addf %356, %357 : vector<2x16xf32>
      %cst_118 = arith.constant 2.000000e+00 : f32
      %359 = vector.broadcast %cst_118 : f32 to vector<2x16xf32>
      %360 = arith.mulf %359, %324 : vector<2x16xf32>
      %361 = arith.addf %307, %360 : vector<2x16xf32>
      %cst_119 = arith.constant 2.000000e+00 : f32
      %362 = vector.broadcast %cst_119 : f32 to vector<2x16xf32>
      %363 = arith.mulf %362, %341 : vector<2x16xf32>
      %364 = arith.addf %361, %363 : vector<2x16xf32>
      %365 = arith.addf %364, %358 : vector<2x16xf32>
      %cst_120 = arith.constant 0.020833334 : f32
      %366 = vector.broadcast %cst_120 : f32 to vector<2x16xf32>
      %367 = arith.mulf %366, %365 : vector<2x16xf32>
      %368 = arith.addf %arg24, %367 : vector<2x16xf32>
      scf.yield %368 : vector<2x16xf32>
    }
    %c0_93 = arith.constant 0 : index
    %c64 = arith.constant 64 : index
    %288 = vector.load %arg22[%c0_93, %c64] : memref<2x80xf32, #tpu.memory_space<vmem>>, vector<2x16xf32>
    tpu.vector_store %arg22[%c0_93, %c64], %287 {strides = array<i32>} : memref<2x80xf32, #tpu.memory_space<vmem>>, vector<2x16xf32>,
    %c0_94 = arith.constant 0 : index
    %c0_95 = arith.constant 0 : index
    %289 = vector.load %arg22[%c0_94, %c0_95] : memref<2x80xf32, #tpu.memory_space<vmem>>, vector<2x80xf32>
    %cst_96 = arith.constant dense<0.000000e+00> : vector<2x20xf32>
    %290 = tpu.matmul %289, %16, %cst_96 {dimension_numbers = #tpu.dot_dimension_numbers<[1], [0], [0], [1], [0, 0, 1, 1], [], []>} : vector<2x80xf32>, vector<80x20xf32>, vector<2x20xf32> -> vector<2x20xf32>
    %291 = vector.broadcast %17 : vector<1x20xf32> to vector<2x20xf32>
    %292 = arith.addf %290, %291 : vector<2x20xf32>
    %c0_97 = arith.constant 0 : index
    %c0_98 = arith.constant 0 : index
    %293 = vector.load %arg20[%c0_97, %c0_98] : memref<2x20xf32, #tpu.memory_space<vmem>>, vector<2x20xf32>
    tpu.vector_store %arg20[%c0_97, %c0_98], %292 {strides = array<i32>} : memref<2x20xf32, #tpu.memory_space<vmem>>, vector<2x20xf32>,
    return
  }
}

</mosaic_0001>

<bundles_post_ra>
// kernel: predict_model_forward.1
= control target key start
LH: loop header
LB: loop body
LE: loop exit
PB: predicated region body
PF: predicated region fallthrough
CT: control target
= control target key end

     0   :  { %vm120_vm0 = vcmask 1043456   ;;  %vm113_vm1 = vcmask 31744   ;;  %v5347_v10 = vmov 0.0|0.0   ;;  %vm5348_vm2 = vmmov 0   ;;  %s5351_s24 = smov 96   ;;  %s6103_s3 = inlined_call_operand.vmem [shape: f32[4,32], index: 3, kind: input, shape index: {}]   ;;  %s6104_s0 = inlined_call_operand.vmem [shape: f32[16,4], index: 0, kind: input, shape index: {}]   ;;  %s6105_s9 = inlined_call_operand.vmem [shape: f32[32,96], index: 9, kind: input, shape index: {}]   ;;  %s6106_s2 = inlined_call_operand.vmem [shape: f32[4,32], index: 2, kind: input, shape index: {}]   ;;  %s6107_s14 = inlined_call_operand.vmem [shape: f32[16,16], index: 14, kind: input, shape index: {}]   ;;  %s6108_s15 = inlined_call_operand.vmem [shape: f32[1,16], index: 15, kind: input, shape index: {}]   ;;  %s6109_s20 = inlined_call_operand.vmem [shape: f32[2,20], index: 20, kind: output, shape index: {0}]   ;;  %s6110_s16 = inlined_call_operand.vmem [shape: f32[16,16], index: 16, kind: input, shape index: {}]   ;;  %s6111_s17 = inlined_call_operand.vmem [shape: f32[1,16], index: 17, kind: input, shape index: {}]   ;;  %s6112_s18 = inlined_call_operand.vmem [shape: f32[80,20], index: 18, kind: input, shape index: {}]   ;;  %s6113_s19 = inlined_call_operand.vmem [shape: f32[1,20], index: 19, kind: input, shape index: {}]   ;;  %s6114_s8 = inlined_call_operand.vmem [shape: f32[1,32], index: 8, kind: input, shape index: {}]   ;;  %s6115_s4 = inlined_call_operand.vmem [shape: f32[4,32], index: 4, kind: input, shape index: {}]   ;;  %s6116_s6 = inlined_call_operand.vmem [shape: f32[1,32], index: 6, kind: input, shape index: {}]   ;;  %s6117_s5 = inlined_call_operand.vmem [shape: f32[1,32], index: 5, kind: input, shape index: {}]   ;;  %s6118_s7 = inlined_call_operand.vmem [shape: f32[1,32], index: 7, kind: input, shape index: {}]   ;;  %s6119_s10 = inlined_call_operand.vmem [shape: f32[32,64], index: 10, kind: input, shape index: {}]   ;;  %s6120_s1 = inlined_call_operand.vmem [shape: f32[2,32], index: 1, kind: input, shape index: {}]   ;;  %s6121_s12 = inlined_call_operand.vmem [shape: f32[32,16], index: 12, kind: input, shape index: {}]   ;;  %s6122_s11 = inlined_call_operand.vmem [shape: f32[1,64], index: 11, kind: input, shape index: {}]   ;;  %s6123_s21 = inlined_call_operand.vmem [shape: f32[2,64], index: 21, kind: output, shape index: {1}]   ;;  %s6124_s13 = inlined_call_operand.vmem [shape: f32[1,16], index: 13, kind: input, shape index: {}]  }
   0x1   :  { %6128 = sst [smem:[#allocation3_spill]] %s6103_s3  ;;  %v5521_v11 = vld [vmem:[%s6110_s16] sm:$0xff]  ;;  %v5526_v12 = vld [vmem:[%s6110_s16 + $0x8] sm:$0xff]  ;;  %v5547_v16 = vld [vmem:[%s6112_s18 + $0x10] sm:$0xff]  ;;  %v5349_v23 = vmov 0.0   ;;  %vm367_vm3 = vcmask 261120  }
   0x2   :  { %6129 = sst [smem:[#allocation4_spill]] %s6104_s0  ;;  %s6134_s26 = sld [smem:[#allocation3_spill]]  ;;  %v5531_v13 = vld [vmem:[%s6111_s17] ss:$0 sm:$0xff]  ;;  %v5542_v15 = vld [vmem:[%s6112_s18 + $0x8] sm:$0xff]  ;;  %v5553_v17 = vld [vmem:[%s6112_s18 + $0x18] sm:$0xff] }
   0x3   :  { %6130 = sst [smem:[#allocation5_spill]] %s6105_s9  ;;  %s6135_s28 = sld [smem:[#allocation4_spill]]  ;;  %v5537_v14 = vld [vmem:[%s6112_s18] sm:$0xff]  ;;  %v5563_v19 = vld [vmem:[%s6112_s18 + $0x28] sm:$0xff]  ;;  %v5570_v20 = vld [vmem:[%s6112_s18 + $0x30] sm:$0xff]  ;;  %vm1316_vm4 = vcmask 517120  }
   0x4   :  { %6131 = sst [smem:[#allocation6_spill]] %s6106_s2  ;;  %v5558_v18 = vld [vmem:[%s6112_s18 + $0x20] sm:$0xff]  ;;  %v5575_v21 = vld [vmem:[%s6112_s18 + $0x38] sm:$0xff]  ;;  %v5588_v24 = vld [vmem:[%s6112_s18 + $0x48] sm:$0xff]  ;;  %s5352_s3 = smov 32   ;;  %vm1411_vm5 = vcmask 123904  }
   0x5   :  { %6132 = sst [smem:[#allocation7_spill]] %s6107_s14  ;;  %s6137_s9 = sld [smem:[#allocation6_spill]]  ;;  %v5580_v22 = vld [vmem:[%s6112_s18 + $0x40] sm:$0xff] }
   0x6   :  { %6133 = sst [smem:[#allocation8_spill]] %s6108_s15  ;;  %s6136_s15 = sld [smem:[#allocation5_spill]]  ;;  %v5593_v25 = vld [vmem:[%s6113_s19] ss:$0 sm:$0xff] }
   0x7   :  { %s6138_s27 = sld [smem:[#allocation7_spill]]  ;;  %s6139_s14 = sld [smem:[#allocation8_spill]]  ;;  %v4282_v28 = vld [vmem:[%s6114_s8] ss:$0 sm:$0xff] }
   0x8   :  { %v68_v0 = vld [vmem:[%s6134_s26] sm:$0xf]  ;;  %s5350_s19 = smov 64  }
   0x9   :  { %v105_v1 = vld [vmem:[%s6135_s28] sm:$0xff]  ;;  %v106_v2 = vld [vmem:[%s6135_s28 + $0x8] sm:$0xff]  ;;  %4515 = vmatprep.subr.msk.mxu1 %vm120_vm0, %v68_v0  ;;  %464 = vrot.lane.b32.xlu0 %v4282_v28, %s5350_s19 }
   0xa   :  { %4517 = vmatprep.mubr.msk.f32.mxu1 %vm113_vm1, %v105_v1  ;;  %4516 = vmatpush3.msk.msra.mxu1 %vm120_vm0, %v68_v0  ;;  %v69_v29 = vld [vmem:[%s6115_s4] sm:$0xf] }
   0xb   :  { %v67_v5 = vld [vmem:[%s6137_s9] sm:$0xf]  ;;  %4518 = vmatmul.mubr.msk.f32.vlgmr.msra.gmra.mrb[0].mxu1 %vm113_vm1, %v106_v2  ;;  %4882 = vmatprep.subr.bf16.mxu1 %v5347_v10 }
   0xc   :  { %v74_v3 = vld [vmem:[%s6136_s15] sm:$0xff]  ;;  %v75_v4 = vld [vmem:[%s6136_s15 + $0x8] sm:$0xff]  ;;  %4510 = vmatprep.subr.msk.mxu0 %vm120_vm0, %v67_v5  ;;  %4512 = vmatprep.mubr.msk.f32.mxu0 %vm113_vm1, %v105_v1  ;;  %v76_v26 = vld [vmem:[%s6136_s15 + $0x10] sm:$0xff] }
   0xd   :  { %v5498_v6 = vpack.c.bf16 %v75_v4, %v74_v3  ;;  %v5503_v7 = vld [vmem:[%s6138_s27] sm:$0xff]  ;;  %v5508_v8 = vld [vmem:[%s6138_s27 + $0x8] sm:$0xff]  ;;  %4511 = vmatpush3.msk.msra.mxu0 %vm120_vm0, %v67_v5  ;;  %4533 = vmatprep.mubr.msk.f32.mxu1 %vm5348_vm2, %v5349_v23  ;;  %v77_v27 = vld [vmem:[%s6136_s15 + $0x18] sm:$0xff] }
   0xe   :  { %v5513_v9 = vld [vmem:[%s6139_s14] ss:$0 sm:$0xff]  ;;  %4513 = vmatmul.mubr.msk.f32.vlgmr.msra.gmra.mrb[0].mxu0 %vm113_vm1, %v106_v2  ;;  %v5608_v30 = vpack.c.bf16 %v77_v27, %v76_v26  ;;  %4520 = vmatprep.subr.msk.mxu0 %vm120_vm0, %v69_v29 }
   0xf   :  { %4884 = vmatpush3.bf16.msra.mxu1 %v5498_v6  ;;  %4522 = vmatprep.mubr.msk.f32.mxu0 %vm113_vm1, %v105_v1  ;;  %v4272_v31 = vld [vmem:[%s6116_s6] ss:$0 sm:$0xff] }
  0x10   :  { %4885 = vmatprep.subr.bf16.mxu1 %v5347_v10  ;;  %4521 = vmatpush3.msk.msra.mxu0 %vm120_vm0, %v69_v29  ;;  %v4268_v36 = vld [vmem:[%s6117_s5] ss:$0 sm:$0xff] }
  0x11   :  { %4888 = vmatprep.subr.bf16.mxu0 %v5347_v10  ;;  %v4276_v45 = vld [vmem:[%s6118_s7] ss:$0 sm:$0xff] }
  0x12   :  { %4523 = vmatmul.mubr.msk.f32.vlgmr.msra.gmra.mrb[2].mxu0 %vm113_vm1, %v106_v2 }
  0x13   :  { %4887 = vmatpush3.bf16.msra.mxu1 %v5608_v30  ;;  %4544 = vmatprep.mubr.msk.f32.mxu0 %vm5348_vm2, %v5349_v23 }
  0x14   :  { %4890 = vmatpush3.bf16.msra.mxu0 %v5498_v6  ;;  %4894 = vmatprep.subr.bf16.mxu1 %v5347_v10 }
  0x15   :  { %4891 = vmatprep.subr.bf16.mxu0 %v5347_v10 }
  0x16   :  { %4534 = vmatmul.mubr.f32.vlgmr.msra.gmra.mrb[2].mxu1 %v5349_v23 }
  0x17   :  { %4896 = vmatpush3.bf16.msra.mxu1 %v5498_v6  ;;  %4555 = vmatprep.mubr.msk.f32.mxu1 %vm5348_vm2, %v5349_v23 }
  0x18   :  { %4897 = vmatprep.subr.bf16.mxu1 %v5347_v10  ;;  %4893 = vmatpush3.bf16.msra.mxu0 %v5608_v30 }
  0x19   :  { %4900 = vmatprep.subr.bf16.mxu0 %v5347_v10 }
  0x1b   :  { %4899 = vmatpush3.bf16.msra.mxu1 %v5608_v30 }
  0x1c   :  { %4906 = vmatprep.subr.bf16.mxu1 %v5347_v10 }
  0x7b   :  { %v5640_v40 = vpop.permute.xlu0 %464 }
  0xde   :  { %v4519_v32 = vpop.f32.mrb[0].mxu1 }
  0xdf   :  { %v5633_v33 = vadd.f32 %v4519_v32, %v4272_v31  ;;  %v274_v34 = vpop.f32.mrb[1].mxu1 }
  0xe0   :  { %v5653_v52 = vadd.f32 %v4272_v31, %v274_v34 }
  0xe1   :  { %v4514_v35 = vpop.f32.mrb[0].mxu0 }
  0xe2   :  { %v5638_v37 = vadd.f32 %v4514_v35, %v4268_v36  ;;  %v190_v38 = vpop.f32.mrb[1].mxu0 }
  0xe3   :  { %v5650_v47 = vadd.f32 %v4268_v36, %v190_v38 }
  0xe5   :  { %v4524_v39 = vpop.f32.mrb[2].mxu0 }
  0xe6   :  { %v358_v41 = vpop.f32.mrb[3].mxu0  ;;  %v5647_v46 = vadd.f32 %v4524_v39, %v4276_v45 }
  0xe7   :  { %v5656_v59 = vadd.f32 %v4276_v45, %v358_v41 }
  0xe9   :  { %v437_v42 = vpop.f32.mrb[2].mxu1 }
  0xea   :  { %449 = vrot.lane.b32.xlu0 %v437_v42, %s5351_s24  ;;  %v4535_v43 = vpop.f32.mrb[3].mxu1  ;;  %v467_v44 = vadd.f32 %v5640_v40, %v437_v42  ;;  %v441_v48 = vadd.f32 %v437_v42, %v5650_v47 }
  0xec   :  { %469 = vrot.lane.b32.xlu1 %v467_v44, %s5350_s19  ;;  %v4280_v49 = vmul.f32 -1.442695, %v441_v48 }
  0xee   :  { %5137 = vpow2.f32 %v4280_v49 }
  0xf8   :  { %v5138_v50 = vpop.eup %5137 }
  0xf9   :  { %v445_v51 = vadd.f32 1.0, %v5138_v50 }
  0xfb   :  { %5139 = vrcp.f32 %v445_v51 }
 0x105   :  { %v5140_v57 = vpop.eup %5139 }
 0x15c   :  { %v450_v53 = vpop.permute.xlu0 %449 }
 0x15d   :  { %v452_v54 = vadd.f32 %v450_v53, %v5653_v52 }
 0x15e   :  { %v470_v56 = vpop.permute.xlu1 %469 }
 0x15f   :  { %v4281_v55 = vmul.f32 -1.442695, %v452_v54  ;;  %v472_v58 = vmul.f32 %v5140_v57, %v470_v56 }
 0x161   :  { %5141 = vpow2.f32 %v4281_v55  ;;  %v473_v62 = vadd.f32 %v472_v58, %v5656_v59 }
 0x16b   :  { %v5142_v60 = vpop.eup %5141 }
 0x16c   :  { %v456_v61 = vadd.f32 1.0, %v5142_v60 }
 0x16e   :  { %5143 = vrcp.f32 %v456_v61 }
 0x16f   :  { %5145 = vtanh.f32 %v473_v62 }
 0x178   :  { %v5144_v63 = vpop.eup %5143 }
 0x179   :  { %v475_v0 = vsub.f32 1.0, %v5144_v63  ;;  %v5146_v1 = vpop.eup %5145  ;;  %v477_v3 = vmul.f32 0.0, %v5144_v63 }
 0x17b   :  { %v476_v2 = vmul.f32 %v5146_v1, %v475_v0 }
 0x17d   :  { %v478_v4 = vadd.f32 %v477_v3, %v476_v2 }
 0x17f   :  { %4545 = vmatmul.mubr.msk.f32.vlgmr.msra.gmra.mrb[4].mxu0 %vm367_vm3, %v478_v4  ;;  %v583_v50 = vrot.slane %v478_v4, 6 }
 0x180   :  { %4902 = vmatpush3.bf16.msra.mxu0 %v5498_v6  ;;  %4566 = vmatprep.mubr.msk.f32.mxu0 %vm5348_vm2, %v5349_v23 }
 0x181   :  { %4903 = vmatprep.subr.bf16.mxu0 %v5347_v10 }
 0x184   :  { %4905 = vmatpush3.bf16.msra.mxu0 %v5608_v30 }
 0x185   :  { %4912 = vmatprep.subr.bf16.mxu0 %v5347_v10 }
 0x252   :  { %v548_v5 = vpop.f32.mrb[4].mxu0 }
 0x253   :  { %v553_v26 = vrot.slane %v548_v5, 6  ;;  %v572_v27 = vadd.f32 %v548_v5, %v5640_v40  ;;  %v4546_v28 = vpop.f32.mrb[5].mxu0 }
 0x255   :  { %v574_v29 = vrot.slane %v572_v27, 6  ;;  %562 = vrot.lane.b32.xlu1 %v553_v26, %s5351_s24  ;;  %v555_v31 = vadd.f32 %v553_v26, %v5650_v47 }
 0x257   :  { %575 = vrot.lane.b32.xlu0 %v574_v29, %s5350_s19  ;;  %v4284_v32 = vmul.f32 -1.442695, %v555_v31 }
 0x259   :  { %5147 = vpow2.f32 %v4284_v32 }
 0x263   :  { %v5148_v34 = vpop.eup %5147 }
 0x264   :  { %v559_v35 = vadd.f32 1.0, %v5148_v34 }
 0x266   :  { %5149 = vrcp.f32 %v559_v35 }
 0x270   :  { %v5150_v42 = vpop.eup %5149 }
 0x2c7   :  { %v563_v36 = vpop.permute.xlu1 %562 }
 0x2c8   :  { %v565_v38 = vadd.f32 %v563_v36, %v5653_v52 }
 0x2c9   :  { %v576_v41 = vpop.permute.xlu0 %575 }
 0x2ca   :  { %v4285_v39 = vmul.f32 -1.442695, %v565_v38  ;;  %v578_v43 = vmul.f32 %v5150_v42, %v576_v41 }
 0x2cc   :  { %5151 = vpow2.f32 %v4285_v39  ;;  %v579_v48 = vadd.f32 %v578_v43, %v5656_v59 }
 0x2d6   :  { %v5152_v44 = vpop.eup %5151 }
 0x2d7   :  { %v569_v45 = vadd.f32 1.0, %v5152_v44 }
 0x2d9   :  { %5153 = vrcp.f32 %v569_v45 }
 0x2da   :  { %5155 = vtanh.f32 %v579_v48 }
 0x2e3   :  { %v5154_v49 = vpop.eup %5153 }
 0x2e4   :  { %v581_v51 = vsub.f32 1.0, %v5154_v49  ;;  %v5156_v53 = vpop.eup %5155  ;;  %v585_v54 = vmul.f32 %v5154_v49, %v583_v50 }
 0x2e6   :  { %v582_v55 = vmul.f32 %v5156_v53, %v581_v51 }
 0x2e8   :  { %v586_v56 = vadd.f32 %v585_v54, %v582_v55 }
 0x2ea   :  { %v588_v57 = vrot.slane %v586_v56, 2  ;;  %v692_v36 = vrot.slane %v586_v56, 6 }
 0x2ec   :  { %4556 = vmatmul.mubr.msk.f32.vlgmr.msra.gmra.mrb[4].mxu1 %vm367_vm3, %v588_v57 }
 0x2ed   :  { %4908 = vmatpush3.bf16.msra.mxu1 %v5498_v6  ;;  %4577 = vmatprep.mubr.msk.f32.mxu1 %vm5348_vm2, %v5349_v23 }
 0x2ee   :  { %4909 = vmatprep.subr.bf16.mxu1 %v5347_v10 }
 0x2f1   :  { %4911 = vmatpush3.bf16.msra.mxu1 %v5608_v30 }
 0x2f2   :  { %4918 = vmatprep.subr.bf16.mxu1 %v5347_v10 }
 0x3bf   :  { %v657_v58 = vpop.f32.mrb[4].mxu1 }
 0x3c0   :  { %v662_v60 = vrot.slane %v657_v58, 4  ;;  %v681_v61 = vadd.f32 %v657_v58, %v5640_v40  ;;  %v4557_v62 = vpop.f32.mrb[5].mxu1 }
 0x3c2   :  { %v683_v63 = vrot.slane %v681_v61, 4  ;;  %671 = vrot.lane.b32.xlu1 %v662_v60, %s5351_s24  ;;  %v664_v0 = vadd.f32 %v662_v60, %v5650_v47 }
 0x3c4   :  { %684 = vrot.lane.b32.xlu0 %v683_v63, %s5350_s19  ;;  %v4287_v1 = vmul.f32 -1.442695, %v664_v0 }
 0x3c6   :  { %5157 = vpow2.f32 %v4287_v1 }
 0x3d0   :  { %v5158_v2 = vpop.eup %5157 }
 0x3d1   :  { %v668_v3 = vadd.f32 1.0, %v5158_v2 }
 0x3d3   :  { %5159 = vrcp.f32 %v668_v3 }
 0x3dd   :  { %v5160_v28 = vpop.eup %5159 }
 0x434   :  { %v672_v4 = vpop.permute.xlu1 %671 }
 0x435   :  { %v674_v5 = vadd.f32 %v672_v4, %v5653_v52 }
 0x436   :  { %v685_v27 = vpop.permute.xlu0 %684 }
 0x437   :  { %v4288_v26 = vmul.f32 -1.442695, %v674_v5  ;;  %v687_v29 = vmul.f32 %v5160_v28, %v685_v27 }
 0x439   :  { %5161 = vpow2.f32 %v4288_v26  ;;  %v688_v34 = vadd.f32 %v687_v29, %v5656_v59 }
 0x443   :  { %v5162_v31 = vpop.eup %5161 }
 0x444   :  { %v678_v32 = vadd.f32 1.0, %v5162_v31 }
 0x446   :  { %5163 = vrcp.f32 %v678_v32 }
 0x447   :  { %5165 = vtanh.f32 %v688_v34 }
 0x450   :  { %v5164_v35 = vpop.eup %5163 }
 0x451   :  { %v690_v38 = vsub.f32 1.0, %v5164_v35  ;;  %v5166_v39 = vpop.eup %5165  ;;  %v694_v41 = vmul.f32 %v5164_v35, %v692_v36 }
 0x453   :  { %v691_v42 = vmul.f32 %v5166_v39, %v690_v38 }
 0x455   :  { %v695_v43 = vadd.f32 %v694_v41, %v691_v42 }
 0x457   :  { %v697_v44 = vrot.slane %v695_v43, 4  ;;  %v801_v3 = vrot.slane %v695_v43, 6 }
 0x459   :  { %4567 = vmatmul.mubr.msk.f32.vlgmr.msra.gmra.mrb[6].mxu0 %vm367_vm3, %v697_v44 }
 0x45a   :  { %4914 = vmatpush3.bf16.msra.mxu0 %v5498_v6  ;;  %4588 = vmatprep.mubr.msk.f32.mxu0 %vm5348_vm2, %v5349_v23 }
 0x45b   :  { %4915 = vmatprep.subr.bf16.mxu0 %v5347_v10 }
 0x45e   :  { %4917 = vmatpush3.bf16.msra.mxu0 %v5608_v30 }
 0x45f   :  { %4924 = vmatprep.subr.bf16.mxu0 %v5347_v10 }
 0x52c   :  { %v766_v45 = vpop.f32.mrb[6].mxu0 }
 0x52d   :  { %v771_v48 = vrot.slane %v766_v45, 2  ;;  %v790_v49 = vadd.f32 %v766_v45, %v5640_v40  ;;  %v4568_v50 = vpop.f32.mrb[7].mxu0 }
 0x52f   :  { %v792_v51 = vrot.slane %v790_v49, 2  ;;  %780 = vrot.lane.b32.xlu1 %v771_v48, %s5351_s24  ;;  %v773_v53 = vadd.f32 %v771_v48, %v5650_v47 }
 0x531   :  { %793 = vrot.lane.b32.xlu0 %v792_v51, %s5350_s19  ;;  %v4290_v54 = vmul.f32 -1.442695, %v773_v53 }
 0x533   :  { %5167 = vpow2.f32 %v4290_v54 }
 0x53d   :  { %v5168_v55 = vpop.eup %5167 }
 0x53e   :  { %v777_v56 = vadd.f32 1.0, %v5168_v55 }
 0x540   :  { %5169 = vrcp.f32 %v777_v56 }
 0x54a   :  { %v5170_v62 = vpop.eup %5169 }
 0x5a1   :  { %v781_v57 = vpop.permute.xlu1 %780 }
 0x5a2   :  { %v783_v58 = vadd.f32 %v781_v57, %v5653_v52 }
 0x5a3   :  { %v794_v61 = vpop.permute.xlu0 %793 }
 0x5a4   :  { %v4291_v60 = vmul.f32 -1.442695, %v783_v58  ;;  %v796_v63 = vmul.f32 %v5170_v62, %v794_v61 }
 0x5a6   :  { %5171 = vpow2.f32 %v4291_v60  ;;  %v797_v2 = vadd.f32 %v796_v63, %v5656_v59 }
 0x5b0   :  { %v5172_v0 = vpop.eup %5171 }
 0x5b1   :  { %v787_v1 = vadd.f32 1.0, %v5172_v0 }
 0x5b3   :  { %5173 = vrcp.f32 %v787_v1 }
 0x5b4   :  { %5175 = vtanh.f32 %v797_v2 }
 0x5bd   :  { %v5174_v47 = vpop.eup %5173 }
 0x5be   :  { %v799_v4 = vsub.f32 1.0, %v5174_v47  ;;  %v5176_v5 = vpop.eup %5175  ;;  %v803_v27 = vmul.f32 %v5174_v47, %v801_v3 }
 0x5c0   :  { %v800_v26 = vmul.f32 %v5176_v5, %v799_v4 }
 0x5c2   :  { %v804_v28 = vadd.f32 %v803_v27, %v800_v26 }
 0x5c4   :  { %v806_v29 = vrot.slane %v804_v28, 6 }
 0x5c6   :  { %4578 = vmatmul.mubr.msk.f32.vlgmr.msra.gmra.mrb[6].mxu1 %vm367_vm3, %v806_v29 }
 0x5c7   :  { %4920 = vmatpush3.bf16.msra.mxu1 %v5498_v6  ;;  %4599 = vmatprep.mubr.msk.f32.mxu1 %vm5348_vm2, %v5349_v23 }
 0x5c8   :  { %4921 = vmatprep.subr.bf16.mxu1 %v5347_v10 }
 0x5cb   :  { %4923 = vmatpush3.bf16.msra.mxu1 %v5608_v30 }
 0x5cc   :  { %4930 = vmatprep.subr.bf16.mxu1 %v5347_v10 }
 0x699   :  { %v875_v52 = vpop.f32.mrb[6].mxu1 }
 0x69a   :  { %v897_v59 = vadd.f32 %v875_v52, %v5640_v40  ;;  %887 = vrot.lane.b32.xlu1 %v875_v52, %s5351_s24  ;;  %v4579_v31 = vpop.f32.mrb[7].mxu1  ;;  %v879_v32 = vadd.f32 %v875_v52, %v5638_v37 }
 0x69c   :  { %899 = vrot.lane.b32.xlu0 %v897_v59, %s5350_s19  ;;  %v4293_v34 = vmul.f32 -1.442695, %v879_v32 }
 0x69e   :  { %5177 = vpow2.f32 %v4293_v34 }
 0x6a8   :  { %v5178_v35 = vpop.eup %5177 }
 0x6a9   :  { %v883_v36 = vadd.f32 1.0, %v5178_v35 }
 0x6ab   :  { %5179 = vrcp.f32 %v883_v36 }
 0x6b5   :  { %v5180_v43 = vpop.eup %5179 }
 0x70c   :  { %v888_v38 = vpop.permute.xlu1 %887 }
 0x70d   :  { %v890_v39 = vadd.f32 %v888_v38, %v5633_v33 }
 0x70e   :  { %v900_v42 = vpop.permute.xlu0 %899 }
 0x70f   :  { %v4294_v41 = vmul.f32 -1.442695, %v890_v39  ;;  %v902_v44 = vmul.f32 %v5180_v43, %v900_v42 }
 0x711   :  { %5181 = vpow2.f32 %v4294_v41  ;;  %v903_v49 = vadd.f32 %v902_v44, %v5647_v46 }
 0x71b   :  { %v5182_v45 = vpop.eup %5181 }
 0x71c   :  { %v894_v48 = vadd.f32 1.0, %v5182_v45 }
 0x71e   :  { %5183 = vrcp.f32 %v894_v48 }
 0x71f   :  { %5185 = vtanh.f32 %v903_v49 }
 0x728   :  { %v5184_v50 = vpop.eup %5183 }
 0x729   :  { %v905_v51 = vsub.f32 1.0, %v5184_v50  ;;  %v5186_v53 = vpop.eup %5185  ;;  %v908_v55 = vmul.f32 %v5184_v50, %v806_v29 }
 0x72b   :  { %v906_v54 = vmul.f32 %v5186_v53, %v905_v51 }
 0x72d   :  { %v909_v56 = vadd.f32 %v908_v55, %v906_v54 }
 0x72f   :  { %4589 = vmatmul.mubr.msk.f32.vlgmr.msra.gmra.mrb[8].mxu0 %vm367_vm3, %v909_v56  ;;  %v1014_v52 = vrot.slane %v909_v56, 6 }
 0x730   :  { %4926 = vmatpush3.bf16.msra.mxu0 %v5498_v6  ;;  %4610 = vmatprep.mubr.msk.f32.mxu0 %vm5348_vm2, %v5349_v23 }
 0x731   :  { %4927 = vmatprep.subr.bf16.mxu0 %v5347_v10 }
 0x734   :  { %4929 = vmatpush3.bf16.msra.mxu0 %v5608_v30 }
 0x735   :  { %4936 = vmatprep.subr.bf16.mxu0 %v5347_v10 }
 0x802   :  { %v979_v57 = vpop.f32.mrb[8].mxu0 }
 0x803   :  { %v984_v58 = vrot.slane %v979_v57, 6  ;;  %v1003_v60 = vadd.f32 %v979_v57, %v5640_v40  ;;  %v4590_v61 = vpop.f32.mrb[9].mxu0 }
 0x805   :  { %v1005_v62 = vrot.slane %v1003_v60, 6  ;;  %993 = vrot.lane.b32.xlu1 %v984_v58, %s5351_s24  ;;  %v986_v6 = vadd.f32 %v984_v58, %v5638_v37 }
 0x807   :  { %1006 = vrot.lane.b32.xlu0 %v1005_v62, %s5350_s19  ;;  %v4296_v63 = vmul.f32 -1.442695, %v986_v6 }
 0x809   :  { %5187 = vpow2.f32 %v4296_v63 }
 0x813   :  { %v5188_v0 = vpop.eup %5187 }
 0x814   :  { %v990_v1 = vadd.f32 1.0, %v5188_v0 }
 0x816   :  { %5189 = vrcp.f32 %v990_v1 }
 0x820   :  { %v5190_v4 = vpop.eup %5189 }
 0x877   :  { %v994_v2 = vpop.permute.xlu1 %993 }
 0x878   :  { %v996_v30 = vadd.f32 %v994_v2, %v5633_v33 }
 0x879   :  { %v1007_v3 = vpop.permute.xlu0 %1006 }
 0x87a   :  { %v4297_v47 = vmul.f32 -1.442695, %v996_v30  ;;  %v1009_v5 = vmul.f32 %v5190_v4, %v1007_v3 }
 0x87c   :  { %5191 = vpow2.f32 %v4297_v47  ;;  %v1010_v28 = vadd.f32 %v1009_v5, %v5647_v46 }
 0x886   :  { %v5192_v26 = vpop.eup %5191 }
 0x887   :  { %v1000_v27 = vadd.f32 1.0, %v5192_v26 }
 0x889   :  { %5193 = vrcp.f32 %v1000_v27  ;;  %v78_v27 = vld [vmem:[%s6119_s10] sm:$0xff] }
 0x88a   :  { %5195 = vtanh.f32 %v1010_v28  ;;  %v79_v28 = vld [vmem:[%s6119_s10 + $0x8] sm:$0xff] }
 0x893   :  { %v5194_v29 = vpop.eup %5193 }
 0x894   :  { %v1012_v59 = vsub.f32 1.0, %v5194_v29  ;;  %v5196_v31 = vpop.eup %5195  ;;  %v1016_v32 = vmul.f32 %v5194_v29, %v1014_v52  ;;  %v4931_v29 = vpack.c.bf16 %v79_v28, %v78_v27  ;;  %v81_v52 = vld [vmem:[%s6119_s10 + $0x18] sm:$0xff]  ;;  %v4306_v27 = vld [vmem:[%s6124_s13] ss:$0 sm:$0xff] }
 0x896   :  { %v1013_v34 = vmul.f32 %v5196_v31, %v1012_v59  ;;  %v1321_v31 = vld [vmem:[%s6120_s1] sm:$0x3] }
 0x898   :  { %v1017_v35 = vadd.f32 %v1016_v32, %v1013_v34 }
 0x89a   :  { %v1019_v36 = vrot.slane %v1017_v35, 2  ;;  %v1123_v62 = vrot.slane %v1017_v35, 6 }
 0x89c   :  { %4600 = vmatmul.mubr.msk.f32.vlgmr.msra.gmra.mrb[8].mxu1 %vm367_vm3, %v1019_v36 }
 0x89d   :  { %4621 = vmatprep.mubr.msk.f32.mxu1 %vm5348_vm2, %v5349_v23  ;;  %4932 = vmatpush3.bf16.msra.mxu1 %v4931_v29 }
 0x89e   :  { %4933 = vmatprep.subr.bf16.mxu1 %v5347_v10 }
 0x96f   :  { %v1088_v38 = vpop.f32.mrb[8].mxu1 }
 0x970   :  { %v1093_v39 = vrot.slane %v1088_v38, 4  ;;  %v1112_v41 = vadd.f32 %v1088_v38, %v5640_v40  ;;  %v4601_v42 = vpop.f32.mrb[9].mxu1 }
 0x972   :  { %v1114_v43 = vrot.slane %v1112_v41, 4  ;;  %1102 = vrot.lane.b32.xlu1 %v1093_v39, %s5351_s24  ;;  %v1095_v44 = vadd.f32 %v1093_v39, %v5638_v37 }
 0x974   :  { %1115 = vrot.lane.b32.xlu0 %v1114_v43, %s5350_s19  ;;  %v4299_v45 = vmul.f32 -1.442695, %v1095_v44 }
 0x976   :  { %5197 = vpow2.f32 %v4299_v45 }
 0x980   :  { %v5198_v48 = vpop.eup %5197 }
 0x981   :  { %v1099_v49 = vadd.f32 1.0, %v5198_v48 }
 0x983   :  { %5199 = vrcp.f32 %v1099_v49 }
 0x98d   :  { %v5200_v55 = vpop.eup %5199 }
 0x9e4   :  { %v1103_v50 = vpop.permute.xlu1 %1102 }
 0x9e5   :  { %v1105_v51 = vadd.f32 %v1103_v50, %v5633_v33 }
 0x9e6   :  { %v1116_v54 = vpop.permute.xlu0 %1115 }
 0x9e7   :  { %v4300_v53 = vmul.f32 -1.442695, %v1105_v51  ;;  %v1118_v56 = vmul.f32 %v5200_v55, %v1116_v54 }
 0x9e9   :  { %5201 = vpow2.f32 %v4300_v53  ;;  %v1119_v60 = vadd.f32 %v1118_v56, %v5647_v46 }
 0x9f3   :  { %v5202_v57 = vpop.eup %5201 }
 0x9f4   :  { %v1109_v58 = vadd.f32 1.0, %v5202_v57 }
 0x9f6   :  { %5203 = vrcp.f32 %v1109_v58  ;;  %v85_v58 = vld [vmem:[%s6121_s12 + $0x10] sm:$0xff] }
 0x9f7   :  { %5205 = vtanh.f32 %v1119_v60 }
 0xa00   :  { %v5204_v61 = vpop.eup %5203 }
 0xa01   :  { %v1121_v6 = vsub.f32 1.0, %v5204_v61  ;;  %v5206_v63 = vpop.eup %5205  ;;  %v1125_v0 = vmul.f32 %v5204_v61, %v1123_v62  ;;  %v86_v61 = vld [vmem:[%s6121_s12 + $0x18] sm:$0xff] }
 0xa02   :  { %v4940_v62 = vpack.c.bf16 %v86_v61, %v85_v58 }
 0xa03   :  { %v1122_v1 = vmul.f32 %v5206_v63, %v1121_v6  ;;  %v4304_v6 = vld [vmem:[%s6122_s11] ss:$0 sm:$0xff] }
 0xa05   :  { %v1126_v2 = vadd.f32 %v1125_v0, %v1122_v1 }
 0xa07   :  { %v1128_v30 = vrot.slane %v1126_v2, 4  ;;  %v1232_v50 = vrot.slane %v1126_v2, 6 }
 0xa09   :  { %4611 = vmatmul.mubr.msk.f32.vlgmr.msra.gmra.mrb[10].mxu0 %vm367_vm3, %v1128_v30 }
 0xa0a   :  { %4632 = vmatprep.mubr.msk.f32.mxu0 %vm5348_vm2, %v5349_v23 }
 0xadc   :  { %v1197_v47 = vpop.f32.mrb[10].mxu0 }
 0xadd   :  { %v1202_v3 = vrot.slane %v1197_v47, 2  ;;  %v1221_v4 = vadd.f32 %v1197_v47, %v5640_v40  ;;  %v4612_v5 = vpop.f32.mrb[11].mxu0  ;;  %v80_v40 = vld [vmem:[%s6119_s10 + $0x10] sm:$0xff] }
 0xade   :  { %v4934_v59 = vpack.c.bf16 %v81_v52, %v80_v40 }
 0xadf   :  { %v1223_v26 = vrot.slane %v1221_v4, 2  ;;  %1211 = vrot.lane.b32.xlu1 %v1202_v3, %s5351_s24  ;;  %v1204_v32 = vadd.f32 %v1202_v3, %v5638_v37 }
 0xae0   :  { %4935 = vmatpush3.bf16.msra.mxu1 %v4934_v59 }
 0xae1   :  { %1224 = vrot.lane.b32.xlu0 %v1223_v26, %s5350_s19  ;;  %v4302_v34 = vmul.f32 -1.442695, %v1204_v32 }
 0xae3   :  { %1323 = vrot.lane.b32.xlu1 %v1321_v31, %s5352_s3  ;;  %5207 = vpow2.f32 %v4302_v34 }
 0xaed   :  { %v5208_v35 = vpop.eup %5207 }
 0xaee   :  { %v1208_v36 = vadd.f32 1.0, %v5208_v35 }
 0xaf0   :  { %5209 = vrcp.f32 %v1208_v36 }
 0xafa   :  { %v5210_v43 = vpop.eup %5209 }
 0xb51   :  { %v1212_v38 = vpop.permute.xlu1 %1211 }
 0xb52   :  { %v1214_v39 = vadd.f32 %v1212_v38, %v5633_v33  ;;  %v83_v33 = vld [vmem:[%s6121_s12] sm:$0xff] }
 0xb53   :  { %v1225_v42 = vpop.permute.xlu0 %1224 }
 0xb54   :  { %v4303_v41 = vmul.f32 -1.442695, %v1214_v39  ;;  %v1227_v44 = vmul.f32 %v5210_v43, %v1225_v42 }
 0xb55   :  { %v1324_v47 = vpop.permute.xlu1 %1323 }
 0xb56   :  { %5211 = vpow2.f32 %v4303_v41  ;;  %v1228_v49 = vadd.f32 %v1227_v44, %v5647_v46  ;;  %v84_v46 = vld [vmem:[%s6121_s12 + $0x8] sm:$0xff] }
 0xb57   :  { %v4937_v60 = vpack.c.bf16 %v84_v46, %v83_v33 }
 0xb59   :  { %4938 = vmatpush3.bf16.msra.mxu0 %v4937_v60 }
 0xb5a   :  { %4939 = vmatprep.subr.bf16.mxu0 %v5347_v10 }
 0xb5d   :  { %4941 = vmatpush3.bf16.msra.mxu0 %v4940_v62 }
 0xb60   :  { %v5212_v45 = vpop.eup %5211 }
 0xb61   :  { %v1218_v48 = vadd.f32 1.0, %v5212_v45 }
 0xb63   :  { %5213 = vrcp.f32 %v1218_v48 }
 0xb64   :  { %5215 = vtanh.f32 %v1228_v49 }
 0xb6d   :  { %v5214_v37 = vpop.eup %5213 }
 0xb6e   :  { %v1230_v51 = vsub.f32 1.0, %v5214_v37  ;;  %v5216_v53 = vpop.eup %5215  ;;  %v1234_v55 = vmul.f32 %v5214_v37, %v1232_v50 }
 0xb70   :  { %v1231_v54 = vmul.f32 %v5216_v53, %v1230_v51 }
 0xb72   :  { %v1235_v56 = vadd.f32 %v1234_v55, %v1231_v54 }
 0xb74   :  { %v1243_v57 = vrot.slane %v1235_v56, 6 }
 0xb76   :  { %4622 = vmatmul.mubr.msk.f32.vlgmr.msra.gmra.mrb[10].mxu1 %vm367_vm3, %v1243_v57 }
 0xc49   :  { %v1312_v63 = vpop.f32.mrb[10].mxu1 }
 0xc4a   :  { %v1313_v0 = vadd.f32 %v4304_v6, %v1312_v63  ;;  %v4623_v1 = vpop.f32.mrb[11].mxu1 }
 0xc4c   :  { %1317 = vst.msk [vmem:[%s6123_s21] sm:$0x3] %vm1316_vm4, %v1313_v0  ;;  %v1318_v2 = vmul.f32 0.5, %v1313_v0  ;;  %s5786_s21 = smov 0  }
 0xc4e   :  { %v1319_v30 = vmul.f32 1.442695, %v1318_v2 }
 0xc50   :  { %5217 = vpow2.f32 %v1319_v30 }
 0xc5a   :  { %v5218_v3 = vpop.eup %5217 }
 0xc5b   :  { %v1326_v4 = vmul.f32 %v5218_v3, %v1324_v47 }
 0xc5d   :  { %1328 = vrot.lane.b32.xlu0 %v1326_v4, %s5351_s24 }
 0xccf   :  { %v1329_v5 = vpop.permute.xlu0 %1328 }
 0xcd0   :  { %v1331_v26 = vadd.f32 %v1329_v5, %v1313_v0 }
 0xcd2   :  { %4633 = vmatmul.mubr.msk.f32.vlgmr.msra.gmra.mrb[12].mxu0 %vm367_vm3, %v1331_v26 }
 0xda5   :  { %v1407_v28 = vpop.f32.mrb[12].mxu0 }
 0xda6   :  { %v1408_v29 = vadd.f32 %v4306_v27, %v1407_v28   ;;  %v4634_v40 = vpop.f32.mrb[13].mxu0 }
 0xda8   :  { %1412 = vst.msk [vmem:[#allocation2] sm:$0x3] %vm1411_vm5, %v1408_v29 }
 0xda9 LB: > { %v5796_v52 = vpack.c.bf16 %v5508_v8, %v5503_v7  ;;  %v5353_v59 = vmov 0.0|0.0   ;;  %vm5354_vm6 = vmmov 0   ;;  %v5355_v31 = vmov 0.0   ;;  %s1418_s21 = sadd.s32 1, %s5321_s21   ;;  %s5321_s21 = sphi %s5786_s21, %s1418_s21   ;;  %v5317_v29 = vphi %v1408_v29, %v6140_v29  }
 0xdaa   : > { %4942 = vmatprep.subr.bf16.mxu0 %v5353_v59  ;;  %4639 = vmatprep.mubr.msk.f32.mxu0 %vm5354_vm6, %v5355_v31  ;;  %vm1426_vm7 = vcmask 130048   ;;  %v5814_v32 = vpack.c.bf16 %v5526_v12, %v5521_v11  ;;  %p1415_p0 = scmp.ge.s32.totalorder %s1418_s21, 8  }
 0xdab   : > { %4944 = vmatpush3.bf16.msra.mxu0 %v5796_v52  ;;  %4945 = vmatprep.subr.bf16.mxu1 %v5353_v59  ;;  %s5356_s13 = smov (%p1415_p0), 16   ;;  %vm2094_vm12 = vcmask (%p1415_p0), 255104   ;;  %s5866_s24 = smov (%p1415_p0), 0  }
 0xdac   : > { %4646 = vmatprep.mubr.msk.f32.mxu1 %vm5354_vm6, %v5355_v31  ;;  %4948 = vmatprep.subr.bf16.mxu0 %v5353_v59 }
 0xdad   : > { %4947 = vmatpush3.bf16.msra.mxu1 %v5814_v32 }
 0xdae   : > { %4640 = vmatmul.mubr.msk.f32.vlgmr.msra.gmra.mrb[0].mxu0 %vm1426_vm7, %v5317_v29  ;;  %4951 = vmatprep.subr.bf16.mxu1 %v5353_v59 }
 0xdaf   : > { %4950 = vmatpush3.bf16.msra.mxu0 %v5796_v52  ;;  %4653 = vmatprep.mubr.msk.f32.mxu0 %vm5354_vm6, %v5355_v31 }
 0xdb0   : > { %4954 = vmatprep.subr.bf16.mxu0 %v5353_v59 }
 0xe81   : > { %v1496_v34 = vpop.f32.mrb[0].mxu0 }
 0xe82   : > { %v1497_v35 = vadd.f32 %v5513_v9, %v1496_v34  ;;  %v4641_v36 = vpop.f32.mrb[1].mxu0 }
 0xe84   : > { %v1501_v38 = vand.u32 2147483647, %v1497_v35  ;;  %v1500_v51 = vmax.f32 %v1497_v35, 0.0 }
 0xe86   : > { %v1502_v39 = vsub.f32 0.0, %v1501_v38 }
 0xe88   : > { %v1503_v41 = vmul.f32 1.442695, %v1502_v39 }
 0xe8a   : > { %5219 = vpow2.f32 %v1503_v41 }
 0xe94   : > { %v5220_v42 = vpop.eup %5219 }
 0xe95   : > { %v1505_v43 = vadd.f32 1.0, %v5220_v42  ;;  %v1508_v44 = vmul.f32 -0.5, %v5220_v42  ;;  %v1511_v48 = vand.u32 2147483647, %v5220_v42 }
 0xe97   : > { %5221 = vlog2.f32 %v1505_v43  ;;  %v1509_v45 = vadd.f32 1.0, %v1508_v44  ;;  %vm1512_vm8 = vcmp.lt.f32.partialorder %v1511_v48, 0.0004427343 }
 0xe99   : > { %v1510_v50 = vmul.f32 %v5220_v42, %v1509_v45 }
 0xea1   : > { %v5222_v49 = vpop.eup %5221 }
 0xea2   : > { %v1507_v37 = vmul.f32 0.6931472, %v5222_v49 }
 0xea4   : > { %v1513_v53 = vsel %vm1512_vm8, %v1510_v50, %v1507_v37 }
 0xea5   : > { %v1514_v54 = vadd.f32 %v1513_v53, %v1500_v51 }
 0xea7   : > { %4647 = vmatmul.mubr.msk.f32.vlgmr.msra.gmra.mrb[0].mxu1 %vm1426_vm7, %v1514_v54 }
 0xea8   : > { %4953 = vmatpush3.bf16.msra.mxu1 %v5814_v32  ;;  %4660 = vmatprep.mubr.msk.f32.mxu1 %vm5354_vm6, %v5355_v31 }
 0xea9   : > { %4957 = vmatprep.subr.bf16.mxu1 %v5353_v59 }
 0xf7a   : > { %v1590_v55 = vpop.f32.mrb[0].mxu1 }
 0xf7b   : > { %v5825_v56 = vadd.f32 %v5531_v13, %v1590_v55  ;;  %v4648_v57 = vpop.f32.mrb[1].mxu1 }
 0xf7d   : > { %v1594_v33 = vmul.f32 0.0625, %v5825_v56 }
 0xf7f   : > { %v1595_v46 = vadd.f32 %v5317_v29, %v1594_v33 }
 0xf81   : > { %4654 = vmatmul.mubr.msk.f32.vlgmr.msra.gmra.mrb[2].mxu0 %vm1426_vm7, %v1595_v46 }
 0xf82   : > { %4956 = vmatpush3.bf16.msra.mxu0 %v5796_v52  ;;  %4667 = vmatprep.mubr.msk.f32.mxu0 %vm5354_vm6, %v5355_v31 }
 0xf83   : > { %4960 = vmatprep.subr.bf16.mxu0 %v5353_v59 }
0x1054   : > { %v1665_v58 = vpop.f32.mrb[2].mxu0 }
0x1055   : > { %v1666_v60 = vadd.f32 %v5513_v9, %v1665_v58  ;;  %v4655_v61 = vpop.f32.mrb[3].mxu0 }
0x1057   : > { %v1670_v62 = vand.u32 2147483647, %v1666_v60  ;;  %v1669_v26 = vmax.f32 %v1666_v60, 0.0 }
0x1059   : > { %v1671_v6 = vsub.f32 0.0, %v1670_v62 }
0x105b   : > { %v1672_v63 = vmul.f32 1.442695, %v1671_v6 }
0x105d   : > { %5223 = vpow2.f32 %v1672_v63 }
0x1067   : > { %v5224_v0 = vpop.eup %5223 }
0x1068   : > { %v1674_v1 = vadd.f32 1.0, %v5224_v0  ;;  %v1677_v2 = vmul.f32 -0.5, %v5224_v0  ;;  %v1680_v47 = vand.u32 2147483647, %v5224_v0 }
0x106a   : > { %5225 = vlog2.f32 %v1674_v1  ;;  %v1678_v30 = vadd.f32 1.0, %v1677_v2  ;;  %vm1681_vm9 = vcmp.lt.f32.partialorder %v1680_v47, 0.0004427343 }
0x106c   : > { %v1679_v5 = vmul.f32 %v5224_v0, %v1678_v30 }
0x1074   : > { %v5226_v3 = vpop.eup %5225 }
0x1075   : > { %v1676_v4 = vmul.f32 0.6931472, %v5226_v3 }
0x1077   : > { %v1682_v27 = vsel %vm1681_vm9, %v1679_v5, %v1676_v4 }
0x1078   : > { %v1683_v28 = vadd.f32 %v1682_v27, %v1669_v26 }
0x107a   : > { %4661 = vmatmul.mubr.msk.f32.vlgmr.msra.gmra.mrb[2].mxu1 %vm1426_vm7, %v1683_v28 }
0x107b   : > { %4959 = vmatpush3.bf16.msra.mxu1 %v5814_v32  ;;  %4674 = vmatprep.mubr.msk.f32.mxu1 %vm5354_vm6, %v5355_v31 }
0x107c   : > { %4963 = vmatprep.subr.bf16.mxu1 %v5353_v59 }
0x114d   : > { %v1753_v40 = vpop.f32.mrb[2].mxu1 }
0x114e   : > { %v1754_v34 = vadd.f32 %v5531_v13, %v1753_v40  ;;  %v4662_v35 = vpop.f32.mrb[3].mxu1 }
0x1150   : > { %v1757_v36 = vmul.f32 0.0625, %v1754_v34  ;;  %v2083_v46 = vmul.f32 2.0, %v1754_v34 }
0x1152   : > { %v1758_v38 = vadd.f32 %v5317_v29, %v1757_v36  ;;  %v2084_v62 = vadd.f32 %v2083_v46, %v5825_v56 }
0x1154   : > { %4668 = vmatmul.mubr.msk.f32.vlgmr.msra.gmra.mrb[4].mxu0 %vm1426_vm7, %v1758_v38 }
0x1155   : > { %4962 = vmatpush3.bf16.msra.mxu0 %v5796_v52  ;;  %4681 = vmatprep.mubr.msk.f32.mxu0 %vm5354_vm6, %v5355_v31 }
0x1227   : > { %v1828_v39 = vpop.f32.mrb[4].mxu0 }
0x1228   : > { %v1829_v41 = vadd.f32 %v5513_v9, %v1828_v39  ;;  %v4669_v42 = vpop.f32.mrb[5].mxu0 }
0x122a   : > { %v1833_v43 = vand.u32 2147483647, %v1829_v41  ;;  %v1832_v55 = vmax.f32 %v1829_v41, 0.0 }
0x122c   : > { %v1834_v59 = vsub.f32 0.0, %v1833_v43 }
0x122e   : > { %v1835_v44 = vmul.f32 1.442695, %v1834_v59 }
0x1230   : > { %5227 = vpow2.f32 %v1835_v44 }
0x123a   : > { %v5228_v45 = vpop.eup %5227 }
0x123b   : > { %v1837_v48 = vadd.f32 1.0, %v5228_v45  ;;  %v1840_v49 = vmul.f32 -0.5, %v5228_v45  ;;  %v1843_v50 = vand.u32 2147483647, %v5228_v45 }
0x123d   : > { %5229 = vlog2.f32 %v1837_v48  ;;  %v1841_v37 = vadd.f32 1.0, %v1840_v49  ;;  %vm1844_vm10 = vcmp.lt.f32.partialorder %v1843_v50, 0.0004427343 }
0x123f   : > { %v1842_v54 = vmul.f32 %v5228_v45, %v1841_v37 }
0x1247   : > { %v5230_v51 = vpop.eup %5229 }
0x1248   : > { %v1839_v53 = vmul.f32 0.6931472, %v5230_v51 }
0x124a   : > { %v1845_v57 = vsel %vm1844_vm10, %v1842_v54, %v1839_v53 }
0x124b   : > { %v1846_v33 = vadd.f32 %v1845_v57, %v1832_v55 }
0x124d   : > { %4675 = vmatmul.mubr.msk.f32.vlgmr.msra.gmra.mrb[4].mxu1 %vm1426_vm7, %v1846_v33 }
0x124e   : > { %4965 = vmatpush3.bf16.msra.mxu1 %v5814_v32  ;;  %4688 = vmatprep.mubr.msk.f32.mxu1 %vm5354_vm6, %v5355_v31 }
0x1320   : > { %v1916_v58 = vpop.f32.mrb[4].mxu1 }
0x1321   : > { %v1917_v60 = vadd.f32 %v5531_v13, %v1916_v58  ;;  %v4676_v61 = vpop.f32.mrb[5].mxu1 }
0x1323   : > { %v1920_v6 = vmul.f32 0.125, %v1917_v60  ;;  %v2085_v63 = vmul.f32 2.0, %v1917_v60 }
0x1325   : > { %v1921_v0 = vadd.f32 %v5317_v29, %v1920_v6  ;;  %v2086_v1 = vadd.f32 %v2085_v63, %v2084_v62 }
0x1327   : > { %4682 = vmatmul.mubr.msk.f32.vlgmr.msra.gmra.mrb[6].mxu0 %vm1426_vm7, %v1921_v0 }
0x13fa   : > { %v1991_v2 = vpop.f32.mrb[6].mxu0 }
0x13fb   : > { %v1992_v30 = vadd.f32 %v5513_v9, %v1991_v2  ;;  %v4683_v47 = vpop.f32.mrb[7].mxu0 }
0x13fd   : > { %v1996_v3 = vand.u32 2147483647, %v1992_v30  ;;  %v1995_v36 = vmax.f32 %v1992_v30, 0.0 }
0x13ff   : > { %v1997_v31 = vsub.f32 0.0, %v1996_v3 }
0x1401   : > { %v1998_v4 = vmul.f32 1.442695, %v1997_v31 }
0x1403   : > { %5231 = vpow2.f32 %v1998_v4 }
0x140d   : > { %v5232_v5 = vpop.eup %5231 }
0x140e   : > { %v2000_v26 = vadd.f32 1.0, %v5232_v5  ;;  %v2003_v27 = vmul.f32 -0.5, %v5232_v5  ;;  %v2006_v28 = vand.u32 2147483647, %v5232_v5 }
0x1410   : > { %5233 = vlog2.f32 %v2000_v26  ;;  %v2004_v56 = vadd.f32 1.0, %v2003_v27  ;;  %vm2007_vm11 = vcmp.lt.f32.partialorder %v2006_v28, 0.0004427343 }
0x1412   : > { %v2005_v35 = vmul.f32 %v5232_v5, %v2004_v56 }
0x141a   : > { %v5234_v40 = vpop.eup %5233 }
0x141b   : > { %v2002_v34 = vmul.f32 0.6931472, %v5234_v40 }
0x141d   : > { %v2008_v38 = vsel %vm2007_vm11, %v2005_v35, %v2002_v34 }
0x141e   : > { %v2009_v39 = vadd.f32 %v2008_v38, %v1995_v36 }
0x1420   : > { %4689 = vmatmul.mubr.msk.f32.vlgmr.msra.gmra.mrb[6].mxu1 %vm1426_vm7, %v2009_v39 }
0x14f3   : > { %v2079_v41 = vpop.f32.mrb[6].mxu1 }
0x14f4   : > { %v2080_v42 = vadd.f32 %v5531_v13, %v2079_v41  ;;  %v4690_v43 = vpop.f32.mrb[7].mxu1 }
0x14f6   : > { %v2087_v59 = vadd.f32 %v2086_v1, %v2080_v42  ;;  %1417 = sbr.rel (!%p1415_p0) target bundleno = 3497 (0xda9), region = 136 }
0x14f8   : > { %v2088_v44 = vmul.f32 0.020833334, %v2087_v59 }
0x14fa   : > { %v2089_v45 = vadd.f32 %v5317_v29, %v2088_v44  }
0x14fc   : > { %v6140_v29 = vmov %v2089_v45  ;;  %2091 = vrot.lane.b32.xlu0 (%p1415_p0), %v2089_v45, %s5356_s13 }
0x156e   :  { %v2092_v48 = vpop.permute.xlu0 %2091 }
0x156f   :  { %2095 = vst.msk [vmem:[#allocation2] sm:$0x3] %vm2094_vm12, %v2092_v48 }
0x1570 LB: > { %v5357_v29 = vmov 0.0|0.0   ;;  %vm5358_vm13 = vmmov 0   ;;  %v5359_v7 = vmov 0.0   ;;  %s2101_s24 = sadd.s32 1, %s5329_s24   ;;  %s5329_s24 = sphi %s5866_s24, %s2101_s24   ;;  %v5325_v45 = vphi %v2089_v45, %v6141_v45  }
0x1571   : > { %4966 = vmatprep.subr.bf16.mxu0 %v5357_v29  ;;  %4695 = vmatprep.mubr.msk.f32.mxu0 %vm5358_vm13, %v5359_v7  ;;  %p2098_p1 = scmp.ge.s32.totalorder %s2101_s24, 8  }
0x1572   : > { %4968 = vmatpush3.bf16.msra.mxu0 %v5796_v52  ;;  %4969 = vmatprep.subr.bf16.mxu1 %v5357_v29  ;;  %vm2777_vm3 = vcmask (%p2098_p1), 386304   ;;  %s5939_s9 = smov (%p2098_p1), 0  }
0x1573   : > { %4971 = vmatpush3.bf16.msra.mxu1 %v5814_v32  ;;  %4702 = vmatprep.mubr.msk.f32.mxu1 %vm5358_vm13, %v5359_v7 }
0x1574   : > { %4972 = vmatprep.subr.bf16.mxu0 %v5357_v29  ;;  %4975 = vmatprep.subr.bf16.mxu1 %v5357_v29 }
0x1575   : > { %4696 = vmatmul.mubr.msk.f32.vlgmr.msra.gmra.mrb[0].mxu0 %vm1426_vm7, %v5325_v45 }
0x1576   : > { %4974 = vmatpush3.bf16.msra.mxu0 %v5796_v52  ;;  %4709 = vmatprep.mubr.msk.f32.mxu0 %vm5358_vm13, %v5359_v7 }
0x1577   : > { %4978 = vmatprep.subr.bf16.mxu0 %v5357_v29 }
0x1648   : > { %v2179_v8 = vpop.f32.mrb[0].mxu0 }
0x1649   : > { %v2180_v11 = vadd.f32 %v5513_v9, %v2179_v8  ;;  %v4697_v12 = vpop.f32.mrb[1].mxu0 }
0x164b   : > { %v2184_v49 = vand.u32 2147483647, %v2180_v11  ;;  %v2183_v60 = vmax.f32 %v2180_v11, 0.0 }
0x164d   : > { %v2185_v37 = vsub.f32 0.0, %v2184_v49 }
0x164f   : > { %v2186_v50 = vmul.f32 1.442695, %v2185_v37 }
0x1651   : > { %5235 = vpow2.f32 %v2186_v50 }
0x165b   : > { %v5236_v51 = vpop.eup %5235 }
0x165c   : > { %v2188_v53 = vadd.f32 1.0, %v5236_v51  ;;  %v2191_v54 = vmul.f32 -0.5, %v5236_v51  ;;  %v2194_v57 = vand.u32 2147483647, %v5236_v51 }
0x165e   : > { %5237 = vlog2.f32 %v2188_v53  ;;  %v2192_v55 = vadd.f32 1.0, %v2191_v54  ;;  %vm2195_vm14 = vcmp.lt.f32.partialorder %v2194_v57, 0.0004427343 }
0x1660   : > { %v2193_v58 = vmul.f32 %v5236_v51, %v2192_v55 }
0x1668   : > { %v5238_v33 = vpop.eup %5237 }
0x1669   : > { %v2190_v46 = vmul.f32 0.6931472, %v5238_v33 }
0x166b   : > { %v2196_v61 = vsel %vm2195_vm14, %v2193_v58, %v2190_v46 }
0x166c   : > { %v2197_v62 = vadd.f32 %v2196_v61, %v2183_v60 }
0x166e   : > { %4703 = vmatmul.mubr.msk.f32.vlgmr.msra.gmra.mrb[0].mxu1 %vm1426_vm7, %v2197_v62 }
0x166f   : > { %4977 = vmatpush3.bf16.msra.mxu1 %v5814_v32  ;;  %4716 = vmatprep.mubr.msk.f32.mxu1 %vm5358_vm13, %v5359_v7 }
0x1670   : > { %4981 = vmatprep.subr.bf16.mxu1 %v5357_v29 }
0x1741   : > { %v2273_v6 = vpop.f32.mrb[0].mxu1 }
0x1742   : > { %v5897_v63 = vadd.f32 %v5531_v13, %v2273_v6  ;;  %v4704_v0 = vpop.f32.mrb[1].mxu1 }
0x1744   : > { %v2277_v1 = vmul.f32 0.0625, %v5897_v63 }
0x1746   : > { %v2278_v2 = vadd.f32 %v5325_v45, %v2277_v1 }
0x1748   : > { %4710 = vmatmul.mubr.msk.f32.vlgmr.msra.gmra.mrb[2].mxu0 %vm1426_vm7, %v2278_v2 }
0x1749   : > { %4980 = vmatpush3.bf16.msra.mxu0 %v5796_v52  ;;  %4723 = vmatprep.mubr.msk.f32.mxu0 %vm5358_vm13, %v5359_v7 }
0x174a   : > { %4984 = vmatprep.subr.bf16.mxu0 %v5357_v29 }
0x181b   : > { %v2348_v30 = vpop.f32.mrb[2].mxu0 }
0x181c   : > { %v2349_v47 = vadd.f32 %v5513_v9, %v2348_v30  ;;  %v4711_v3 = vpop.f32.mrb[3].mxu0 }
0x181e   : > { %v2353_v31 = vand.u32 2147483647, %v2349_v47  ;;  %v2352_v38 = vmax.f32 %v2349_v47, 0.0 }
0x1820   : > { %v2354_v4 = vsub.f32 0.0, %v2353_v31 }
0x1822   : > { %v2355_v5 = vmul.f32 1.442695, %v2354_v4 }
0x1824   : > { %5239 = vpow2.f32 %v2355_v5 }
0x182e   : > { %v5240_v26 = vpop.eup %5239 }
0x182f   : > { %v2357_v27 = vadd.f32 1.0, %v5240_v26  ;;  %v2360_v56 = vmul.f32 -0.5, %v5240_v26  ;;  %v2363_v40 = vand.u32 2147483647, %v5240_v26 }
0x1831   : > { %5241 = vlog2.f32 %v2357_v27  ;;  %v2361_v28 = vadd.f32 1.0, %v2360_v56  ;;  %vm2364_vm15 = vcmp.lt.f32.partialorder %v2363_v40, 0.0004427343 }
0x1833   : > { %v2362_v36 = vmul.f32 %v5240_v26, %v2361_v28 }
0x183b   : > { %v5242_v34 = vpop.eup %5241 }
0x183c   : > { %v2359_v35 = vmul.f32 0.6931472, %v5242_v34 }
0x183e   : > { %v2365_v39 = vsel %vm2364_vm15, %v2362_v36, %v2359_v35 }
0x183f   : > { %v2366_v41 = vadd.f32 %v2365_v39, %v2352_v38 }
0x1841   : > { %4717 = vmatmul.mubr.msk.f32.vlgmr.msra.gmra.mrb[2].mxu1 %vm1426_vm7, %v2366_v41 }
0x1842   : > { %4983 = vmatpush3.bf16.msra.mxu1 %v5814_v32  ;;  %4730 = vmatprep.mubr.msk.f32.mxu1 %vm5358_vm13, %v5359_v7 }
0x1843   : > { %4987 = vmatprep.subr.bf16.mxu1 %v5357_v29 }
0x1914   : > { %v2436_v42 = vpop.f32.mrb[2].mxu1 }
0x1915   : > { %v2437_v43 = vadd.f32 %v5531_v13, %v2436_v42  ;;  %v4718_v59 = vpop.f32.mrb[3].mxu1 }
0x1917   : > { %v2440_v44 = vmul.f32 0.0625, %v2437_v43  ;;  %v2766_v62 = vmul.f32 2.0, %v2437_v43 }
0x1919   : > { %v2441_v48 = vadd.f32 %v5325_v45, %v2440_v44  ;;  %v2767_v2 = vadd.f32 %v2766_v62, %v5897_v63 }
0x191b   : > { %4724 = vmatmul.mubr.msk.f32.vlgmr.msra.gmra.mrb[4].mxu0 %vm1426_vm7, %v2441_v48 }
0x191c   : > { %4986 = vmatpush3.bf16.msra.mxu0 %v5796_v52  ;;  %4737 = vmatprep.mubr.msk.f32.mxu0 %vm5358_vm13, %v5359_v7 }
0x19ee   : > { %v2511_v8 = vpop.f32.mrb[4].mxu0 }
0x19ef   : > { %v2512_v11 = vadd.f32 %v5513_v9, %v2511_v8  ;;  %v4725_v12 = vpop.f32.mrb[5].mxu0 }
0x19f1   : > { %v2516_v49 = vand.u32 2147483647, %v2512_v11  ;;  %v2515_v58 = vmax.f32 %v2512_v11, 0.0 }
0x19f3   : > { %v2517_v29 = vsub.f32 0.0, %v2516_v49 }
0x19f5   : > { %v2518_v37 = vmul.f32 1.442695, %v2517_v29 }
0x19f7   : > { %5243 = vpow2.f32 %v2518_v37 }
0x1a01   : > { %v5244_v50 = vpop.eup %5243 }
0x1a02   : > { %v2520_v51 = vadd.f32 1.0, %v5244_v50  ;;  %v2523_v53 = vmul.f32 -0.5, %v5244_v50  ;;  %v2526_v55 = vand.u32 2147483647, %v5244_v50 }
0x1a04   : > { %5245 = vlog2.f32 %v2520_v51  ;;  %v2524_v54 = vadd.f32 1.0, %v2523_v53  ;;  %vm2527_vm0 = vcmp.lt.f32.partialorder %v2526_v55, 0.0004427343 }
0x1a06   : > { %v2525_v46 = vmul.f32 %v5244_v50, %v2524_v54 }
0x1a0e   : > { %v5246_v57 = vpop.eup %5245 }
0x1a0f   : > { %v2522_v33 = vmul.f32 0.6931472, %v5246_v57 }
0x1a11   : > { %v2528_v60 = vsel %vm2527_vm0, %v2525_v46, %v2522_v33 }
0x1a12   : > { %v2529_v61 = vadd.f32 %v2528_v60, %v2515_v58 }
0x1a14   : > { %4731 = vmatmul.mubr.msk.f32.vlgmr.msra.gmra.mrb[4].mxu1 %vm1426_vm7, %v2529_v61 }
0x1a15   : > { %4989 = vmatpush3.bf16.msra.mxu1 %v5814_v32  ;;  %4744 = vmatprep.mubr.msk.f32.mxu1 %vm5358_vm13, %v5359_v7 }
0x1ae7   : > { %v2599_v6 = vpop.f32.mrb[4].mxu1 }
0x1ae8   : > { %v2600_v0 = vadd.f32 %v5531_v13, %v2599_v6  ;;  %v4732_v1 = vpop.f32.mrb[5].mxu1 }
0x1aea   : > { %v2603_v30 = vmul.f32 0.125, %v2600_v0  ;;  %v2768_v47 = vmul.f32 2.0, %v2600_v0 }
0x1aec   : > { %v2604_v3 = vadd.f32 %v5325_v45, %v2603_v30  ;;  %v2769_v31 = vadd.f32 %v2768_v47, %v2767_v2 }
0x1aee   : > { %4738 = vmatmul.mubr.msk.f32.vlgmr.msra.gmra.mrb[6].mxu0 %vm1426_vm7, %v2604_v3 }
0x1bc1   : > { %v2674_v4 = vpop.f32.mrb[6].mxu0 }
0x1bc2   : > { %v2675_v5 = vadd.f32 %v5513_v9, %v2674_v4  ;;  %v4739_v26 = vpop.f32.mrb[7].mxu0 }
0x1bc4   : > { %v2679_v27 = vand.u32 2147483647, %v2675_v5  ;;  %v2678_v41 = vmax.f32 %v2675_v5, 0.0 }
0x1bc6   : > { %v2680_v7 = vsub.f32 0.0, %v2679_v27 }
0x1bc8   : > { %v2681_v56 = vmul.f32 1.442695, %v2680_v7 }
0x1bca   : > { %5247 = vpow2.f32 %v2681_v56 }
0x1bd4   : > { %v5248_v28 = vpop.eup %5247 }
0x1bd5   : > { %v2683_v40 = vadd.f32 1.0, %v5248_v28  ;;  %v2686_v34 = vmul.f32 -0.5, %v5248_v28  ;;  %v2689_v35 = vand.u32 2147483647, %v5248_v28 }
0x1bd7   : > { %5249 = vlog2.f32 %v2683_v40  ;;  %v2687_v63 = vadd.f32 1.0, %v2686_v34  ;;  %vm2690_vm1 = vcmp.lt.f32.partialorder %v2689_v35, 0.0004427343 }
0x1bd9   : > { %v2688_v39 = vmul.f32 %v5248_v28, %v2687_v63 }
0x1be1   : > { %v5250_v36 = vpop.eup %5249 }
0x1be2   : > { %v2685_v38 = vmul.f32 0.6931472, %v5250_v36 }
0x1be4   : > { %v2691_v42 = vsel %vm2690_vm1, %v2688_v39, %v2685_v38 }
0x1be5   : > { %v2692_v43 = vadd.f32 %v2691_v42, %v2678_v41 }
0x1be7   : > { %4745 = vmatmul.mubr.msk.f32.vlgmr.msra.gmra.mrb[6].mxu1 %vm1426_vm7, %v2692_v43 }
0x1cba   : > { %v2762_v59 = vpop.f32.mrb[6].mxu1 }
0x1cbb   : > { %v2763_v44 = vadd.f32 %v5531_v13, %v2762_v59  ;;  %v4746_v48 = vpop.f32.mrb[7].mxu1 }
0x1cbd   : > { %v2770_v8 = vadd.f32 %v2769_v31, %v2763_v44  ;;  %2100 = sbr.rel (!%p2098_p1) target bundleno = 5488 (0x1570), region = 147 }
0x1cbf   : > { %v2771_v11 = vmul.f32 0.020833334, %v2770_v8 }
0x1cc1   : > { %v2772_v12 = vadd.f32 %v5325_v45, %v2771_v11  }
0x1cc3   : > { %v6141_v45 = vmov %v2772_v12  ;;  %2774 = vrot.lane.b32.xlu0 (%p2098_p1), %v2772_v12, %s5352_s3 }
0x1d35   :  { %v2775_v49 = vpop.permute.xlu0 %2774 }
0x1d36   :  { %2778 = vst.msk [vmem:[#allocation2] sm:$0x3] %vm2777_vm3, %v2775_v49 }
0x1d37 LB: > { %v5360_v45 = vmov 0.0|0.0   ;;  %vm5361_vm4 = vmmov 0   ;;  %v5362_v29 = vmov 0.0   ;;  %s2784_s9 = sadd.s32 1, %s5337_s9   ;;  %s5337_s9 = sphi %s5939_s9, %s2784_s9   ;;  %v5333_v12 = vphi %v2772_v12, %v6142_v12  }
0x1d38   : > { %4990 = vmatprep.subr.bf16.mxu0 %v5360_v45  ;;  %4751 = vmatprep.mubr.msk.f32.mxu0 %vm5361_vm4, %v5362_v29  ;;  %p2781_p2 = scmp.ge.s32.totalorder %s2784_s9, 8  }
0x1d39   : > { %4992 = vmatpush3.bf16.msra.mxu0 %v5796_v52  ;;  %4993 = vmatprep.subr.bf16.mxu1 %v5360_v45  ;;  %s5363_s5 = smov (%p2781_p2), 48   ;;  %vm3460_vm10 = vcmask (%p2781_p2), 517504   ;;  %s6011_s7 = smov (%p2781_p2), 0  }
0x1d3a   : > { %4995 = vmatpush3.bf16.msra.mxu1 %v5814_v32  ;;  %4758 = vmatprep.mubr.msk.f32.mxu1 %vm5361_vm4, %v5362_v29 }
0x1d3b   : > { %4996 = vmatprep.subr.bf16.mxu0 %v5360_v45  ;;  %4999 = vmatprep.subr.bf16.mxu1 %v5360_v45 }
0x1d3c   : > { %4752 = vmatmul.mubr.msk.f32.vlgmr.msra.gmra.mrb[0].mxu0 %vm1426_vm7, %v5333_v12 }
0x1d3d   : > { %4998 = vmatpush3.bf16.msra.mxu0 %v5796_v52  ;;  %4765 = vmatprep.mubr.msk.f32.mxu0 %vm5361_vm4, %v5362_v29 }
0x1d3e   : > { %5002 = vmatprep.subr.bf16.mxu0 %v5360_v45 }
0x1e0f   : > { %v2862_v37 = vpop.f32.mrb[0].mxu0 }
0x1e10   : > { %v2863_v50 = vadd.f32 %v5513_v9, %v2862_v37  ;;  %v4753_v51 = vpop.f32.mrb[1].mxu0 }
0x1e12   : > { %v2867_v53 = vand.u32 2147483647, %v2863_v50  ;;  %v2866_v0 = vmax.f32 %v2863_v50, 0.0 }
0x1e14   : > { %v2868_v54 = vsub.f32 0.0, %v2867_v53 }
0x1e16   : > { %v2869_v55 = vmul.f32 1.442695, %v2868_v54 }
0x1e18   : > { %5251 = vpow2.f32 %v2869_v55 }
0x1e22   : > { %v5252_v57 = vpop.eup %5251 }
0x1e23   : > { %v2871_v33 = vadd.f32 1.0, %v5252_v57  ;;  %v2874_v46 = vmul.f32 -0.5, %v5252_v57  ;;  %v2877_v60 = vand.u32 2147483647, %v5252_v57 }
0x1e25   : > { %5253 = vlog2.f32 %v2871_v33  ;;  %v2875_v58 = vadd.f32 1.0, %v2874_v46  ;;  %vm2878_vm5 = vcmp.lt.f32.partialorder %v2877_v60, 0.0004427343 }
0x1e27   : > { %v2876_v6 = vmul.f32 %v5252_v57, %v2875_v58 }
0x1e2f   : > { %v5254_v61 = vpop.eup %5253 }
0x1e30   : > { %v2873_v62 = vmul.f32 0.6931472, %v5254_v61 }
0x1e32   : > { %v2879_v1 = vsel %vm2878_vm5, %v2876_v6, %v2873_v62 }
0x1e33   : > { %v2880_v2 = vadd.f32 %v2879_v1, %v2866_v0 }
0x1e35   : > { %4759 = vmatmul.mubr.msk.f32.vlgmr.msra.gmra.mrb[0].mxu1 %vm1426_vm7, %v2880_v2 }
0x1e36   : > { %5001 = vmatpush3.bf16.msra.mxu1 %v5814_v32  ;;  %4772 = vmatprep.mubr.msk.f32.mxu1 %vm5361_vm4, %v5362_v29 }
0x1e37   : > { %5005 = vmatprep.subr.bf16.mxu1 %v5360_v45 }
0x1f08   : > { %v2956_v30 = vpop.f32.mrb[0].mxu1 }
0x1f09   : > { %v5970_v47 = vadd.f32 %v5531_v13, %v2956_v30  ;;  %v4760_v3 = vpop.f32.mrb[1].mxu1 }
0x1f0b   : > { %v2960_v31 = vmul.f32 0.0625, %v5970_v47 }
0x1f0d   : > { %v2961_v4 = vadd.f32 %v5333_v12, %v2960_v31 }
0x1f0f   : > { %4766 = vmatmul.mubr.msk.f32.vlgmr.msra.gmra.mrb[2].mxu0 %vm1426_vm7, %v2961_v4 }
0x1f10   : > { %5004 = vmatpush3.bf16.msra.mxu0 %v5796_v52  ;;  %4779 = vmatprep.mubr.msk.f32.mxu0 %vm5361_vm4, %v5362_v29 }
0x1f11   : > { %5008 = vmatprep.subr.bf16.mxu0 %v5360_v45 }
0x1fe2   : > { %v3031_v5 = vpop.f32.mrb[2].mxu0 }
0x1fe3   : > { %v3032_v26 = vadd.f32 %v5513_v9, %v3031_v5  ;;  %v4767_v27 = vpop.f32.mrb[3].mxu0 }
0x1fe5   : > { %v3036_v7 = vand.u32 2147483647, %v3032_v26  ;;  %v3035_v42 = vmax.f32 %v3032_v26, 0.0 }
0x1fe7   : > { %v3037_v56 = vsub.f32 0.0, %v3036_v7 }
0x1fe9   : > { %v3038_v28 = vmul.f32 1.442695, %v3037_v56 }
0x1feb   : > { %5255 = vpow2.f32 %v3038_v28 }
0x1ff5   : > { %v5256_v40 = vpop.eup %5255 }
0x1ff6   : > { %v3040_v34 = vadd.f32 1.0, %v5256_v40  ;;  %v3043_v63 = vmul.f32 -0.5, %v5256_v40  ;;  %v3046_v36 = vand.u32 2147483647, %v5256_v40 }
0x1ff8   : > { %5257 = vlog2.f32 %v3040_v34  ;;  %v3044_v35 = vadd.f32 1.0, %v3043_v63  ;;  %vm3047_vm6 = vcmp.lt.f32.partialorder %v3046_v36, 0.0004427343 }
0x1ffa   : > { %v3045_v41 = vmul.f32 %v5256_v40, %v3044_v35 }
0x2002   : > { %v5258_v38 = vpop.eup %5257 }
0x2003   : > { %v3042_v39 = vmul.f32 0.6931472, %v5258_v38 }
0x2005   : > { %v3048_v43 = vsel %vm3047_vm6, %v3045_v41, %v3042_v39 }
0x2006   : > { %v3049_v59 = vadd.f32 %v3048_v43, %v3035_v42 }
0x2008   : > { %4773 = vmatmul.mubr.msk.f32.vlgmr.msra.gmra.mrb[2].mxu1 %vm1426_vm7, %v3049_v59 }
0x2009   : > { %5007 = vmatpush3.bf16.msra.mxu1 %v5814_v32  ;;  %4786 = vmatprep.mubr.msk.f32.mxu1 %vm5361_vm4, %v5362_v29 }
0x200a   : > { %5011 = vmatprep.subr.bf16.mxu1 %v5360_v45 }
0x20db   : > { %v3119_v44 = vpop.f32.mrb[2].mxu1 }
0x20dc   : > { %v3120_v48 = vadd.f32 %v5531_v13, %v3119_v44  ;;  %v4774_v8 = vpop.f32.mrb[3].mxu1 }
0x20de   : > { %v3123_v11 = vmul.f32 0.0625, %v3120_v48  ;;  %v3449_v2 = vmul.f32 2.0, %v3120_v48 }
0x20e0   : > { %v3124_v49 = vadd.f32 %v5333_v12, %v3123_v11  ;;  %v3450_v4 = vadd.f32 %v3449_v2, %v5970_v47 }
0x20e2   : > { %4780 = vmatmul.mubr.msk.f32.vlgmr.msra.gmra.mrb[4].mxu0 %vm1426_vm7, %v3124_v49 }
0x20e3   : > { %5010 = vmatpush3.bf16.msra.mxu0 %v5796_v52  ;;  %4793 = vmatprep.mubr.msk.f32.mxu0 %vm5361_vm4, %v5362_v29 }
0x21b5   : > { %v3194_v37 = vpop.f32.mrb[4].mxu0 }
0x21b6   : > { %v3195_v50 = vadd.f32 %v5513_v9, %v3194_v37  ;;  %v4781_v51 = vpop.f32.mrb[5].mxu0 }
0x21b8   : > { %v3199_v53 = vand.u32 2147483647, %v3195_v50  ;;  %v3198_v6 = vmax.f32 %v3195_v50, 0.0 }
0x21ba   : > { %v3200_v45 = vsub.f32 0.0, %v3199_v53 }
0x21bc   : > { %v3201_v54 = vmul.f32 1.442695, %v3200_v45 }
0x21be   : > { %5259 = vpow2.f32 %v3201_v54 }
0x21c8   : > { %v5260_v55 = vpop.eup %5259 }
0x21c9   : > { %v3203_v57 = vadd.f32 1.0, %v5260_v55  ;;  %v3206_v33 = vmul.f32 -0.5, %v5260_v55  ;;  %v3209_v58 = vand.u32 2147483647, %v5260_v55 }
0x21cb   : > { %5261 = vlog2.f32 %v3203_v57  ;;  %v3207_v46 = vadd.f32 1.0, %v3206_v33  ;;  %vm3210_vm8 = vcmp.lt.f32.partialorder %v3209_v58, 0.0004427343 }
0x21cd   : > { %v3208_v62 = vmul.f32 %v5260_v55, %v3207_v46 }
0x21d5   : > { %v5262_v60 = vpop.eup %5261 }
0x21d6   : > { %v3205_v61 = vmul.f32 0.6931472, %v5262_v60 }
0x21d8   : > { %v3211_v0 = vsel %vm3210_vm8, %v3208_v62, %v3205_v61 }
0x21d9   : > { %v3212_v1 = vadd.f32 %v3211_v0, %v3198_v6 }
0x21db   : > { %4787 = vmatmul.mubr.msk.f32.vlgmr.msra.gmra.mrb[4].mxu1 %vm1426_vm7, %v3212_v1 }
0x21dc   : > { %5013 = vmatpush3.bf16.msra.mxu1 %v5814_v32  ;;  %4800 = vmatprep.mubr.msk.f32.mxu1 %vm5361_vm4, %v5362_v29 }
0x22ae   : > { %v3282_v30 = vpop.f32.mrb[4].mxu1 }
0x22af   : > { %v3283_v3 = vadd.f32 %v5531_v13, %v3282_v30  ;;  %v4788_v31 = vpop.f32.mrb[5].mxu1 }
0x22b1   : > { %v3286_v5 = vmul.f32 0.125, %v3283_v3  ;;  %v3451_v26 = vmul.f32 2.0, %v3283_v3 }
0x22b3   : > { %v3287_v27 = vadd.f32 %v5333_v12, %v3286_v5  ;;  %v3452_v7 = vadd.f32 %v3451_v26, %v3450_v4 }
0x22b5   : > { %4794 = vmatmul.mubr.msk.f32.vlgmr.msra.gmra.mrb[6].mxu0 %vm1426_vm7, %v3287_v27 }
0x2388   : > { %v3357_v56 = vpop.f32.mrb[6].mxu0 }
0x2389   : > { %v3358_v28 = vadd.f32 %v5513_v9, %v3357_v56  ;;  %v4795_v40 = vpop.f32.mrb[7].mxu0 }
0x238b   : > { %v3362_v34 = vand.u32 2147483647, %v3358_v28  ;;  %v3361_v59 = vmax.f32 %v3358_v28, 0.0 }
0x238d   : > { %v3363_v29 = vsub.f32 0.0, %v3362_v34 }
0x238f   : > { %v3364_v63 = vmul.f32 1.442695, %v3363_v29 }
0x2391   : > { %5263 = vpow2.f32 %v3364_v63 }
0x239b   : > { %v5264_v35 = vpop.eup %5263 }
0x239c   : > { %v3366_v36 = vadd.f32 1.0, %v5264_v35  ;;  %v3369_v38 = vmul.f32 -0.5, %v5264_v35  ;;  %v3372_v39 = vand.u32 2147483647, %v5264_v35 }
0x239e   : > { %5265 = vlog2.f32 %v3366_v36  ;;  %v3370_v47 = vadd.f32 1.0, %v3369_v38  ;;  %vm3373_vm9 = vcmp.lt.f32.partialorder %v3372_v39, 0.0004427343 }
0x23a0   : > { %v3371_v43 = vmul.f32 %v5264_v35, %v3370_v47 }
0x23a8   : > { %v5266_v41 = vpop.eup %5265 }
0x23a9   : > { %v3368_v42 = vmul.f32 0.6931472, %v5266_v41 }
0x23ab   : > { %v3374_v44 = vsel %vm3373_vm9, %v3371_v43, %v3368_v42 }
0x23ac   : > { %v3375_v48 = vadd.f32 %v3374_v44, %v3361_v59 }
0x23ae   : > { %4801 = vmatmul.mubr.msk.f32.vlgmr.msra.gmra.mrb[6].mxu1 %vm1426_vm7, %v3375_v48 }
0x2481   : > { %v3445_v8 = vpop.f32.mrb[6].mxu1 }
0x2482   : > { %v3446_v11 = vadd.f32 %v5531_v13, %v3445_v8  ;;  %v4802_v49 = vpop.f32.mrb[7].mxu1 }
0x2484   : > { %v3453_v37 = vadd.f32 %v3452_v7, %v3446_v11  ;;  %2783 = sbr.rel (!%p2781_p2) target bundleno = 7479 (0x1d37), region = 158 }
0x2486   : > { %v3454_v50 = vmul.f32 0.020833334, %v3453_v37 }
0x2488   : > { %v3455_v51 = vadd.f32 %v5333_v12, %v3454_v50  }
0x248a   : > { %v6142_v12 = vmov %v3455_v51  ;;  %3457 = vrot.lane.b32.xlu0 (%p2781_p2), %v3455_v51, %s5363_s5 }
0x24fc   :  { %v3458_v53 = vpop.permute.xlu0 %3457 }
0x24fd   :  { %3461 = vst.msk [vmem:[#allocation2] sm:$0x3] %vm3460_vm10, %v3458_v53 }
0x24fe LB: > { %v5364_v12 = vmov 0.0|0.0   ;;  %vm5365_vm11 = vmmov 0   ;;  %v5366_v45 = vmov 0.0   ;;  %s3467_s7 = sadd.s32 1, %s5345_s7   ;;  %s5345_s7 = sphi %s6011_s7, %s3467_s7   ;;  %v5341_v51 = vphi %v3455_v51, %v6143_v51  }
0x24ff   : > { %5014 = vmatprep.subr.bf16.mxu0 %v5364_v12  ;;  %4807 = vmatprep.mubr.msk.f32.mxu0 %vm5365_vm11, %v5366_v45  ;;  %p3464_p3 = scmp.ge.s32.totalorder %s3467_s7, 8  }
0x2500   : > { %5016 = vmatpush3.bf16.msra.mxu0 %v5796_v52  ;;  %5017 = vmatprep.subr.bf16.mxu1 %v5364_v12  ;;  %vm4226_vm0 = vcmask (%p3464_p3), 156672  }
0x2501   : > { %5019 = vmatpush3.bf16.msra.mxu1 %v5814_v32  ;;  %4814 = vmatprep.mubr.msk.f32.mxu1 %vm5365_vm11, %v5366_v45 }
0x2502   : > { %5020 = vmatprep.subr.bf16.mxu0 %v5364_v12  ;;  %5023 = vmatprep.subr.bf16.mxu1 %v5364_v12 }
0x2503   : > { %4808 = vmatmul.mubr.msk.f32.vlgmr.msra.gmra.mrb[0].mxu0 %vm1426_vm7, %v5341_v51 }
0x2504   : > { %5022 = vmatpush3.bf16.msra.mxu0 %v5796_v52  ;;  %4821 = vmatprep.mubr.msk.f32.mxu0 %vm5365_vm11, %v5366_v45 }
0x2505   : > { %5026 = vmatprep.subr.bf16.mxu0 %v5364_v12 }
0x25d6   : > { %v3545_v54 = vpop.f32.mrb[0].mxu0 }
0x25d7   : > { %v3546_v55 = vadd.f32 %v5513_v9, %v3545_v54  ;;  %v4809_v57 = vpop.f32.mrb[1].mxu0 }
0x25d9   : > { %v3550_v33 = vand.u32 2147483647, %v3546_v55  ;;  %v3549_v3 = vmax.f32 %v3546_v55, 0.0 }
0x25db   : > { %v3551_v46 = vsub.f32 0.0, %v3550_v33 }
0x25dd   : > { %v3552_v58 = vmul.f32 1.442695, %v3551_v46 }
0x25df   : > { %5267 = vpow2.f32 %v3552_v58 }
0x25e9   : > { %v5268_v60 = vpop.eup %5267 }
0x25ea   : > { %v3554_v61 = vadd.f32 1.0, %v5268_v60  ;;  %v3557_v62 = vmul.f32 -0.5, %v5268_v60  ;;  %v3560_v0 = vand.u32 2147483647, %v5268_v60 }
0x25ec   : > { %5269 = vlog2.f32 %v3554_v61  ;;  %v3558_v6 = vadd.f32 1.0, %v3557_v62  ;;  %vm3561_vm12 = vcmp.lt.f32.partialorder %v3560_v0, 0.0004427343 }
0x25ee   : > { %v3559_v30 = vmul.f32 %v5268_v60, %v3558_v6 }
0x25f6   : > { %v5270_v1 = vpop.eup %5269 }
0x25f7   : > { %v3556_v2 = vmul.f32 0.6931472, %v5270_v1 }
0x25f9   : > { %v3562_v31 = vsel %vm3561_vm12, %v3559_v30, %v3556_v2 }
0x25fa   : > { %v3563_v4 = vadd.f32 %v3562_v31, %v3549_v3 }
0x25fc   : > { %4815 = vmatmul.mubr.msk.f32.vlgmr.msra.gmra.mrb[0].mxu1 %vm1426_vm7, %v3563_v4 }
0x25fd   : > { %5025 = vmatpush3.bf16.msra.mxu1 %v5814_v32  ;;  %4828 = vmatprep.mubr.msk.f32.mxu1 %vm5365_vm11, %v5366_v45 }
0x25fe   : > { %5029 = vmatprep.subr.bf16.mxu1 %v5364_v12 }
0x26cf   : > { %v3639_v5 = vpop.f32.mrb[0].mxu1 }
0x26d0   : > { %v6042_v26 = vadd.f32 %v5531_v13, %v3639_v5  ;;  %v4816_v27 = vpop.f32.mrb[1].mxu1 }
0x26d2   : > { %v3643_v7 = vmul.f32 0.0625, %v6042_v26 }
0x26d4   : > { %v3644_v56 = vadd.f32 %v5341_v51, %v3643_v7 }
0x26d6   : > { %4822 = vmatmul.mubr.msk.f32.vlgmr.msra.gmra.mrb[2].mxu0 %vm1426_vm7, %v3644_v56 }
0x26d7   : > { %5028 = vmatpush3.bf16.msra.mxu0 %v5796_v52  ;;  %4835 = vmatprep.mubr.msk.f32.mxu0 %vm5365_vm11, %v5366_v45 }
0x26d8   : > { %5032 = vmatprep.subr.bf16.mxu0 %v5364_v12 }
0x27a9   : > { %v3714_v28 = vpop.f32.mrb[2].mxu0 }
0x27aa   : > { %v3715_v40 = vadd.f32 %v5513_v9, %v3714_v28  ;;  %v4823_v34 = vpop.f32.mrb[3].mxu0 }
0x27ac   : > { %v3719_v29 = vand.u32 2147483647, %v3715_v40  ;;  %v3718_v44 = vmax.f32 %v3715_v40, 0.0 }
0x27ae   : > { %v3720_v63 = vsub.f32 0.0, %v3719_v29 }
0x27b0   : > { %v3721_v35 = vmul.f32 1.442695, %v3720_v63 }
0x27b2   : > { %5271 = vpow2.f32 %v3721_v35 }
0x27bc   : > { %v5272_v36 = vpop.eup %5271 }
0x27bd   : > { %v3723_v38 = vadd.f32 1.0, %v5272_v36  ;;  %v3726_v47 = vmul.f32 -0.5, %v5272_v36  ;;  %v3729_v41 = vand.u32 2147483647, %v5272_v36 }
0x27bf   : > { %5273 = vlog2.f32 %v3723_v38  ;;  %v3727_v39 = vadd.f32 1.0, %v3726_v47  ;;  %vm3730_vm13 = vcmp.lt.f32.partialorder %v3729_v41, 0.0004427343 }
0x27c1   : > { %v3728_v59 = vmul.f32 %v5272_v36, %v3727_v39 }
0x27c9   : > { %v5274_v42 = vpop.eup %5273 }
0x27ca   : > { %v3725_v43 = vmul.f32 0.6931472, %v5274_v42 }
0x27cc   : > { %v3731_v48 = vsel %vm3730_vm13, %v3728_v59, %v3725_v43 }
0x27cd   : > { %v3732_v8 = vadd.f32 %v3731_v48, %v3718_v44 }
0x27cf   : > { %4829 = vmatmul.mubr.msk.f32.vlgmr.msra.gmra.mrb[2].mxu1 %vm1426_vm7, %v3732_v8 }
0x27d0   : > { %5031 = vmatpush3.bf16.msra.mxu1 %v5814_v32  ;;  %4842 = vmatprep.mubr.msk.f32.mxu1 %vm5365_vm11, %v5366_v45 }
0x27d1   : > { %5035 = vmatprep.subr.bf16.mxu1 %v5364_v12 }
0x28a2   : > { %v3802_v11 = vpop.f32.mrb[2].mxu1 }
0x28a3   : > { %v3803_v49 = vadd.f32 %v5531_v13, %v3802_v11  ;;  %v4830_v37 = vpop.f32.mrb[3].mxu1 }
0x28a5   : > { %v3806_v50 = vmul.f32 0.0625, %v3803_v49  ;;  %v4132_v4 = vmul.f32 2.0, %v3803_v49 }
0x28a7   : > { %v3807_v53 = vadd.f32 %v5341_v51, %v3806_v50  ;;  %v4133_v56 = vadd.f32 %v4132_v4, %v6042_v26 }
0x28a9   : > { %4836 = vmatmul.mubr.msk.f32.vlgmr.msra.gmra.mrb[4].mxu0 %vm1426_vm7, %v3807_v53 }
0x28aa   : > { %5034 = vmatpush3.bf16.msra.mxu0 %v5796_v52  ;;  %4849 = vmatprep.mubr.msk.f32.mxu0 %vm5365_vm11, %v5366_v45 }
0x28ab   :  { %5038 = vmatprep.subr.bf16.mxu0 (%p3464_p3), %v5347_v10 }
0x297c   : > { %v3877_v54 = vpop.f32.mrb[4].mxu0 }
0x297d   : > { %v3878_v55 = vadd.f32 %v5513_v9, %v3877_v54  ;;  %v4837_v57 = vpop.f32.mrb[5].mxu0 }
0x297f   : > { %v3882_v33 = vand.u32 2147483647, %v3878_v55  ;;  %v3881_v30 = vmax.f32 %v3878_v55, 0.0 }
0x2981   : > { %v3883_v12 = vsub.f32 0.0, %v3882_v33  ;;  %v5039_v33 = vpack.c.bf16 (%p3464_p3), %v5542_v15, %v5537_v14 }
0x2983   : > { %v3884_v46 = vmul.f32 1.442695, %v3883_v12  ;;  %v5045_v12 = vpack.c.bf16 (%p3464_p3), %v5563_v19, %v5558_v18 }
0x2985   : > { %5275 = vpow2.f32 %v3884_v46 }
0x298f   : > { %v5276_v58 = vpop.eup %5275 }
0x2990   : > { %v3886_v60 = vadd.f32 1.0, %v5276_v58  ;;  %v3889_v61 = vmul.f32 -0.5, %v5276_v58  ;;  %v3892_v6 = vand.u32 2147483647, %v5276_v58 }
0x2992   : > { %5277 = vlog2.f32 %v3886_v60  ;;  %v3890_v62 = vadd.f32 1.0, %v3889_v61  ;;  %vm3893_vm14 = vcmp.lt.f32.partialorder %v3892_v6, 0.0004427343 }
0x2994   : > { %v3891_v2 = vmul.f32 %v5276_v58, %v3890_v62 }
0x299c   : > { %v5278_v0 = vpop.eup %5277 }
0x299d   : > { %v3888_v1 = vmul.f32 0.6931472, %v5278_v0 }
0x299f   : > { %v3894_v3 = vsel %vm3893_vm14, %v3891_v2, %v3888_v1 }
0x29a0   : > { %v3895_v31 = vadd.f32 %v3894_v3, %v3881_v30 }
0x29a2   : > { %4843 = vmatmul.mubr.msk.f32.vlgmr.msra.gmra.mrb[4].mxu1 %vm1426_vm7, %v3895_v31 }
0x29a3   : > { %5037 = vmatpush3.bf16.msra.mxu1 %v5814_v32  ;;  %4856 = vmatprep.mubr.msk.f32.mxu1 %vm5365_vm11, %v5366_v45 }
0x2a75   : > { %v3965_v5 = vpop.f32.mrb[4].mxu1 }
0x2a76   : > { %v3966_v27 = vadd.f32 %v5531_v13, %v3965_v5  ;;  %v4844_v7 = vpop.f32.mrb[5].mxu1 }
0x2a78   : > { %v3969_v28 = vmul.f32 0.125, %v3966_v27  ;;  %v4134_v40 = vmul.f32 2.0, %v3966_v27 }
0x2a7a   : > { %v3970_v34 = vadd.f32 %v5341_v51, %v3969_v28  ;;  %v4135_v29 = vadd.f32 %v4134_v40, %v4133_v56 }
0x2a7c   : > { %4850 = vmatmul.mubr.msk.f32.vlgmr.msra.gmra.mrb[6].mxu0 %vm1426_vm7, %v3970_v34 }
0x2a7d   :  { %4879 = vmatprep.mubr.msk.f32.mxu0 (%p3464_p3), %vm5348_vm2, %v5349_v23  ;;  %5040 = vmatpush3.bf16.msra.mxu0 (%p3464_p3), %v5039_v33  ;;  %vm4143_vm2 = vcmask (%p3464_p3), 648704  }
0x2a7e   :  { %5041 = vmatprep.subr.bf16.mxu0 (%p3464_p3), %v5347_v10 }
0x2b4f   : > { %v4040_v63 = vpop.f32.mrb[6].mxu0 }
0x2b50   : > { %v4041_v35 = vadd.f32 %v5513_v9, %v4040_v63  ;;  %v4851_v36 = vpop.f32.mrb[7].mxu0  ;;  %v5048_v9 = vpack.c.bf16 (%p3464_p3), %v5575_v21, %v5570_v20 }
0x2b52   : > { %v4045_v38 = vand.u32 2147483647, %v4041_v35  ;;  %v4044_v8 = vmax.f32 %v4041_v35, 0.0 }
0x2b54   : > { %v4046_v45 = vsub.f32 0.0, %v4045_v38 }
0x2b56   : > { %v4047_v47 = vmul.f32 1.442695, %v4046_v45 }
0x2b58   : > { %5279 = vpow2.f32 %v4047_v47 }
0x2b62   : > { %v5280_v39 = vpop.eup %5279 }
0x2b63   : > { %v4049_v41 = vadd.f32 1.0, %v5280_v39  ;;  %v4052_v42 = vmul.f32 -0.5, %v5280_v39  ;;  %v4055_v43 = vand.u32 2147483647, %v5280_v39 }
0x2b65   : > { %5281 = vlog2.f32 %v4049_v41  ;;  %v4053_v26 = vadd.f32 1.0, %v4052_v42  ;;  %vm4056_vm15 = vcmp.lt.f32.partialorder %v4055_v43, 0.0004427343 }
0x2b67   : > { %v4054_v48 = vmul.f32 %v5280_v39, %v4053_v26 }
0x2b6f   : > { %v5282_v59 = vpop.eup %5281 }
0x2b70   : > { %v4051_v44 = vmul.f32 0.6931472, %v5282_v59 }
0x2b72   : > { %v4057_v11 = vsel %vm4056_vm15, %v4054_v48, %v4051_v44 }
0x2b73   : > { %v4058_v49 = vadd.f32 %v4057_v11, %v4044_v8 }
0x2b75   : > { %4857 = vmatmul.mubr.msk.f32.vlgmr.msra.gmra.mrb[6].mxu1 %vm1426_vm7, %v4058_v49  ;;  %vm4152_vm7 = vcmask (%p3464_p3), 654336  }
0x2c48   : > { %v4128_v37 = vpop.f32.mrb[6].mxu1 }
0x2c49   : > { %v4129_v50 = vadd.f32 %v5531_v13, %v4128_v37  ;;  %v4858_v53 = vpop.f32.mrb[7].mxu1  ;;  %v5051_v13 = vpack.c.bf16 (%p3464_p3), %v5588_v24, %v5580_v22 }
0x2c4b   : > { %v4136_v54 = vadd.f32 %v4135_v29, %v4129_v50  ;;  %3466 = sbr.rel (!%p3464_p3) target bundleno = 9470 (0x24fe), region = 169 }
0x2c4d   : > { %v4137_v55 = vmul.f32 0.020833334, %v4136_v54 }
0x2c4f   : > { %v4138_v57 = vadd.f32 %v5341_v51, %v4137_v55  }
0x2c51   : > { %v6143_v51 = vmov %v4138_v57  ;;  %4140 = vrot.lane.b32.xlu0 (%p3464_p3), %v4138_v57, %s5350_s19 }
0x2c52   :  { %v5042_v51 = vpack.c.bf16 %v5553_v17, %v5547_v16 }
0x2c54   :  { %5043 = vmatpush3.bf16.msra.mxu0 %v5042_v51 }
0x2c55   :  { %5044 = vmatprep.subr.bf16.mxu0 %v5347_v10 }
0x2c58   :  { %5046 = vmatpush3.bf16.msra.mxu0 %v5045_v12 }
0x2c59   :  { %5047 = vmatprep.subr.bf16.mxu0 %v5347_v10 }
0x2c5c   :  { %5049 = vmatpush3.bf16.msra.mxu0 %v5048_v9 }
0x2c5d   :  { %5050 = vmatprep.subr.bf16.mxu0 %v5347_v10 }
0x2c60   :  { %5052 = vmatpush3.bf16.msra.mxu0 %v5051_v13 }
0x2cc3   :  { %v4141_v14 = vpop.permute.xlu0 %4140 }
0x2cc4   :  { %4144 = vst.msk [vmem:[#allocation2] sm:$0x3] %vm4143_vm2, %v4141_v14 }
0x2ccb   :  { %v4145_v15 = vld [vmem:[#allocation2] sm:$0x3] }
0x2ccc   :  { %4880 = vmatmul.mubr.msk.f32.vlgmr.msra.gmra.mrb[0].mxu0 %vm4152_vm7, %v4145_v15 }
0x2d9f   :  { %v4222_v16 = vpop.f32.mrb[0].mxu0 }
0x2da0   :  { %v4223_v17 = vadd.f32 %v5593_v25, %v4222_v16  ;;  %v4881_v18 = vpop.f32.mrb[1].mxu0 }
0x2da2   :  { %4227 = vst.msk [vmem:[%s6109_s20] sm:$0x3] %vm4226_vm0, %v4223_v17 }

</bundles_post_ra>
